<compile_context>
chip_gen: v7x
topology: tpu7x:2x2x1
jax: 0.10.0
libtpu: 0.0.40
codegen_flags: <defaults>
</compile_context>

<pallas_src>
import math
import functools

import jax
import jax.numpy as jnp
from jax.experimental import pallas as pl
from jax.experimental.pallas import tpu as pltpu


# ----------------------------- small helpers --------------------------------

def _round_up(x, m):
    return (x + m - 1) // m * m


def _choose_tq(T):
    """Sequence tile: prefer multiples of 16 (bf16 sublane pack); fall back to
    the full sequence (block == full dim is always legal)."""
    for cand in (256, 128, 64, 32, 16):
        if T % cand == 0:
            return cand
    return T


def _choose_hidden(H):
    """MLP hidden (4C) tile."""
    for cand in (2048, 1536, 1280, 1024, 768, 640, 512, 384, 256, 128):
        if H % cand == 0:
            return cand
    return H


def _layernorm(x, w, b, eps=1e-5):
    mu = jnp.mean(x, axis=-1, keepdims=True)
    var = jnp.mean((x - mu) ** 2, axis=-1, keepdims=True)
    return (x - mu) * jax.lax.rsqrt(var + eps) * w + b


def _new_gelu(x):
    return 0.5 * x * (1.0 + jnp.tanh(math.sqrt(2.0 / math.pi)
                                     * (x + 0.044715 * x ** 3)))


def _const_spec(shape):
    """BlockSpec for a weight whose block index never changes."""
    nd = len(shape)
    return pl.BlockSpec(shape, lambda *_: (0,) * nd)


@functools.lru_cache(maxsize=None)
def _vmem_budget():
    """Generation-aware VMEM budget: ~80% of physical VMEM, capped at 112 MiB.
    v5e/v6e (128 MiB) -> ~102 MiB; v7x (64 MiB) -> ~51 MiB of headroomed budget."""
    try:
        cap = int(pltpu.get_tpu_info().vmem_capacity_bytes)
    except Exception:
        cap = 64 << 20
    return int(max(32 << 20, min((cap * 4) // 5, 112 << 20)))


def _cparams(semantics):
    return pltpu.CompilerParams(dimension_semantics=semantics,
                                vmem_limit_bytes=_vmem_budget())


# ------------------------- kernel 1: LN1 + QKV proj --------------------------
# Writes Q, V in (B, nh, T, hd) and K pre-transposed (B, nh, hd, T); the head
# split happens in-kernel (static lane slices + one XLU transpose) so no XLA
# transpose HBM passes are needed downstream.

def qkv_kernel(x_ref, ln1w_ref, ln1b_ref,
               wq_ref, wk_ref, wv_ref, bq_ref, bk_ref, bv_ref,
               q_ref, kT_ref, v_ref):
    nh = q_ref.shape[1]
    hd = q_ref.shape[3]
    x = x_ref[0]                                              # (TQ, C) f32
    h = _layernorm(x, ln1w_ref[...], ln1b_ref[...]).astype(jnp.bfloat16)

    q = jnp.dot(h, wq_ref[...], preferred_element_type=jnp.float32) + bq_ref[...]
    k = jnp.dot(h, wk_ref[...], preferred_element_type=jnp.float32) + bk_ref[...]
    v = jnp.dot(h, wv_ref[...], preferred_element_type=jnp.float32) + bv_ref[...]

    qb = q.astype(jnp.bfloat16)                               # (TQ, C)
    kTb = k.T.astype(jnp.bfloat16)                            # (C, TQ) single transpose
    vb = v.astype(jnp.bfloat16)

    for hh in range(nh):                                      # static unroll over heads
        lo = hh * hd
        q_ref[0, hh] = qb[:, lo:lo + hd]                      # (TQ, hd)
        kT_ref[0, hh] = kTb[lo:lo + hd, :]                    # (hd, TQ)
        v_ref[0, hh] = vb[:, lo:lo + hd]


def run_qkv(x, lp, nh, hd):
    B, T, C = x.shape
    TQ = _choose_tq(T)
    grid = (B, T // TQ)
    xspec = pl.BlockSpec((1, TQ, C), lambda b, t: (b, t, 0))
    weights = [lp["ln1_w"], lp["ln1_b"],
               lp["w_q"], lp["w_k"], lp["w_v"],
               lp["b_q"], lp["b_k"], lp["b_v"]]
    wspecs = [_const_spec(w.shape) for w in weights]

    q_sds = jax.ShapeDtypeStruct((B, nh, T, hd), jnp.bfloat16)
    kT_sds = jax.ShapeDtypeStruct((B, nh, hd, T), jnp.bfloat16)
    q_spec = pl.BlockSpec((1, nh, TQ, hd), lambda b, t: (b, 0, t, 0))
    kT_spec = pl.BlockSpec((1, nh, hd, TQ), lambda b, t: (b, 0, 0, t))

    return pl.pallas_call(
        qkv_kernel,
        out_shape=(q_sds, kT_sds, q_sds),
        grid=grid,
        in_specs=[xspec] + wspecs,
        out_specs=(q_spec, kT_spec, q_spec),
        compiler_params=_cparams(("parallel", "parallel")),
    )(x, *weights)


# ------- kernel 2: flash causal attention + out-proj + residual-1 (fused) ----

def attn_kernel(x_ref, q_ref, kT_ref, v_ref, wproj_ref, bproj_ref, o_ref,
                m_scr, l_scr, acc_scr, *, scale):
    qt = pl.program_id(1)
    kt = pl.program_id(2)
    nkt = pl.num_programs(2)
    nh, tq = q_ref.shape[1], q_ref.shape[2]
    tk = v_ref.shape[2]

    @pl.when(kt == 0)
    def _init():
        m_scr[...] = jnp.full_like(m_scr, -jnp.inf)
        l_scr[...] = jnp.zeros_like(l_scr)
        acc_scr[...] = jnp.zeros_like(acc_scr)

    @pl.when(kt * tk < (qt + 1) * tq)        # skip fully-masked (future) KV tiles
    def _update():
        q = q_ref[0]                         # (nh, TQ, hd) bf16
        kT = kT_ref[0]                       # (nh, hd, TK) bf16
        v = v_ref[0]                         # (nh, TK, hd) bf16
        s = jnp.einsum("hqd,hdk->hqk", q, kT,
                       preferred_element_type=jnp.float32) * scale  # (nh,TQ,TK) f32
        row = qt * tq + jax.lax.broadcasted_iota(jnp.int32, (tq, tk), 0)
        col = kt * tk + jax.lax.broadcasted_iota(jnp.int32, (tq, tk), 1)
        s = jnp.where((col <= row)[None, :, :], s, -1e30)

        m_prev = m_scr[...]
        m_new = jnp.maximum(m_prev, jnp.max(s, axis=-1, keepdims=True))
        alpha = jnp.exp(m_prev - m_new)
        p = jnp.exp(s - m_new)
        l_scr[...] = alpha * l_scr[...] + jnp.sum(p, axis=-1, keepdims=True)
        acc_scr[...] = alpha * acc_scr[...] + jnp.einsum(
            "hqk,hkd->hqd", p.astype(jnp.bfloat16), v,
            preferred_element_type=jnp.float32)
        m_scr[...] = m_new

    @pl.when(kt == nkt - 1)
    def _finalize():
        y = acc_scr[...] * pl.reciprocal(l_scr[...], approx=False)  # exact softmax denom
        nh_heads = y.shape[0]
        y = jnp.concatenate([y[hh] for hh in range(nh_heads)], axis=-1)  # (TQ, C)
        proj = jnp.dot(y.astype(jnp.bfloat16), wproj_ref[...],
                       preferred_element_type=jnp.float32) + bproj_ref[...]
        o_ref[0] = x_ref[0] + proj           # residual-1, lane-dense f32 output


def run_attn(x, q, kT, v, lp):
    B, T, C = x.shape
    nh, hd = q.shape[1], q.shape[3]
    TQ = _choose_tq(T)
    TK = TQ
    grid = (B, T // TQ, T // TK)
    scale = 1.0 / math.sqrt(hd)

    xspec = pl.BlockSpec((1, TQ, C), lambda b, qt, kt: (b, qt, 0))
    q_spec = pl.BlockSpec((1, nh, TQ, hd), lambda b, qt, kt: (b, 0, qt, 0))
    kT_spec = pl.BlockSpec((1, nh, hd, TK), lambda b, qt, kt: (b, 0, 0, kt))
    v_spec = pl.BlockSpec((1, nh, TK, hd), lambda b, qt, kt: (b, 0, kt, 0))
    weights = [lp["w_proj"], lp["b_proj"]]
    wspecs = [_const_spec(w.shape) for w in weights]

    return pl.pallas_call(
        functools.partial(attn_kernel, scale=scale),
        out_shape=jax.ShapeDtypeStruct((B, T, C), jnp.float32),
        grid=grid,
        in_specs=[xspec, q_spec, kT_spec, v_spec] + wspecs,
        out_specs=pl.BlockSpec((1, TQ, C), lambda b, qt, kt: (b, qt, 0)),
        scratch_shapes=[pltpu.VMEM((nh, TQ, 1), jnp.float32),
                        pltpu.VMEM((nh, TQ, 1), jnp.float32),
                        pltpu.VMEM((nh, TQ, hd), jnp.float32)],
        compiler_params=_cparams(("parallel", "parallel", "arbitrary")),
    )(x, q, kT, v, *weights)


# -------- kernel 3: LN2 + MLP (hidden-dim tiled) + residual-2 -----------------

def mlp_kernel(x_ref, ln2w_ref, ln2b_ref, wfc_ref, bfc_ref, wmp_ref, bmp_ref,
               o_ref, h_scr, acc_scr):
    j = pl.program_id(2)

    @pl.when(j == 0)
    def _init():
        h_scr[...] = _layernorm(x_ref[0], ln2w_ref[...],
                                ln2b_ref[...]).astype(jnp.bfloat16)
        acc_scr[...] = jnp.zeros_like(acc_scr)

    fc = jnp.dot(h_scr[...], wfc_ref[...],
                 preferred_element_type=jnp.float32) + bfc_ref[...]   # (TQ, TH)
    g = _new_gelu(fc).astype(jnp.bfloat16)
    acc_scr[...] += jnp.dot(g, wmp_ref[...], preferred_element_type=jnp.float32)

    @pl.when(j == pl.num_programs(2) - 1)
    def _finalize():
        o_ref[0] = x_ref[0] + acc_scr[...] + bmp_ref[...]             # residual-2


def run_mlp(x1, lp):
    B, T, C = x1.shape
    TQ = _choose_tq(T)
    H = lp["w_fc"].shape[1]                    # 4C
    TH = _choose_hidden(H)
    grid = (B, T // TQ, H // TH)
    xspec = pl.BlockSpec((1, TQ, C), lambda b, t, j: (b, t, 0))
    in_specs = [
        xspec,
        _const_spec(lp["ln2_w"].shape),
        _const_spec(lp["ln2_b"].shape),
        pl.BlockSpec((C, TH), lambda b, t, j: (0, j)),
        pl.BlockSpec((1, TH), lambda b, t, j: (0, j)),
        pl.BlockSpec((TH, C), lambda b, t, j: (j, 0)),
        _const_spec(lp["b_mp"].shape),
    ]
    return pl.pallas_call(
        mlp_kernel,
        out_shape=jax.ShapeDtypeStruct((B, T, C), jnp.float32),
        grid=grid,
        in_specs=in_specs,
        out_specs=pl.BlockSpec((1, TQ, C), lambda b, t, j: (b, t, 0)),
        scratch_shapes=[pltpu.VMEM((TQ, C), jnp.bfloat16),
                        pltpu.VMEM((TQ, C), jnp.float32)],
        compiler_params=_cparams(("parallel", "parallel", "arbitrary")),
    )(x1, lp["ln2_w"], lp["ln2_b"], lp["w_fc"], lp["b_fc"],
      lp["w_mp"], lp["b_mp"])


# ------------------------- final LN + lm_head (tiled) ------------------------
# LayerNorm is computed once per row tile (at vocab-tile 0) into a bf16 scratch
# and reused across all vocab tiles; vocab is the inner grid axis so the head
# weight tile is reused across the whole row tile.

def lm_head_kernel(x_ref, lnw_ref, lnb_ref, w_ref, o_ref, h_scr):
    @pl.when(pl.program_id(1) == 0)
    def _():
        h_scr[...] = _layernorm(x_ref[...], lnw_ref[...],
                                lnb_ref[...]).astype(jnp.bfloat16)
    o_ref[...] = jnp.dot(h_scr[...], w_ref[...],
                         preferred_element_type=jnp.float32)


def run_lm_head(x, lnf_w, lnf_b, w_head_t, vocab_size):
    B, T, C = x.shape
    Vp = w_head_t.shape[1]                       # vocab already padded at init
    M = B * T
    TM = min(1024, _round_up(M, 8))              # big row tile -> fewer weight re-streams
    TN = min(512, Vp)
    Mp = _round_up(M, TM)

    x2 = x.reshape(M, C)
    if Mp != M:
        x2 = jnp.pad(x2, ((0, Mp - M), (0, 0)))

    logits = pl.pallas_call(
        lm_head_kernel,
        out_shape=jax.ShapeDtypeStruct((Mp, Vp), jnp.float32),
        grid=(Mp // TM, Vp // TN),
        in_specs=[
            pl.BlockSpec((TM, C), lambda i, j: (i, 0)),
            _const_spec(lnf_w.shape),
            _const_spec(lnf_b.shape),
            pl.BlockSpec((C, TN), lambda i, j: (0, j)),
        ],
        out_specs=pl.BlockSpec((TM, TN), lambda i, j: (i, j)),
        scratch_shapes=[pltpu.VMEM((TM, C), jnp.bfloat16)],
        compiler_params=_cparams(("parallel", "arbitrary")),
    )(x2, lnf_w, lnf_b, w_head_t)
    return logits[:M, :vocab_size].reshape(B, T, vocab_size)


# ------------------------------ parameter init -------------------------------

def init_params(key, *, n_layer, n_head, n_embd, vocab_size, block_size):
    """Mirrors GPT._init_weights: std=0.02 normals, zero biases, ones LN weight,
    c_proj std scaled by 1/sqrt(2*n_layer).  Linear weights stored transposed
    (in, out) in bfloat16; lm_head weight is vocab-padded once at init."""
    C = n_embd
    std = 0.02
    proj_std = 0.02 / math.sqrt(2 * n_layer)
    keys = jax.random.split(key, 3 + n_layer)
    kit = iter(keys)

    def normal(k, shape, s):
        return s * jax.random.normal(k, shape, jnp.float32)

    V = vocab_size
    Vp = _round_up(V, 512) if V > 512 else _round_up(V, 128)
    # NOTE: reference module does not tie lm_head.weight to wte.
    w_head = normal(next(kit), (V, C), std)
    w_head_t = jnp.zeros((C, Vp), jnp.bfloat16).at[:, :V].set(
        w_head.T.astype(jnp.bfloat16))

    params = {
        "wte": normal(next(kit), (vocab_size, C), std),
        "wpe": normal(next(kit), (block_size, C), std),
        "lnf_w": jnp.ones((1, C), jnp.float32),
        "lnf_b": jnp.zeros((1, C), jnp.float32),
        "w_head_t": w_head_t,                               # (C, Vp) bf16
        "layers": [],
    }

    for _ in range(n_layer):
        k0, k1, k2, k3 = jax.random.split(next(kit), 4)
        w_attn_t = normal(k0, (3 * C, C), std).T            # (C, 3C)
        layer = {
            "ln1_w": jnp.ones((1, C), jnp.float32),
            "ln1_b": jnp.zeros((1, C), jnp.float32),
            "w_q": w_attn_t[:, :C].astype(jnp.bfloat16),
            "w_k": w_attn_t[:, C:2 * C].astype(jnp.bfloat16),
            "w_v": w_attn_t[:, 2 * C:].astype(jnp.bfloat16),
            "b_q": jnp.zeros((1, C), jnp.float32),
            "b_k": jnp.zeros((1, C), jnp.float32),
            "b_v": jnp.zeros((1, C), jnp.float32),
            "w_proj": normal(k1, (C, C), proj_std).T.astype(jnp.bfloat16),
            "b_proj": jnp.zeros((1, C), jnp.float32),
            "ln2_w": jnp.ones((1, C), jnp.float32),
            "ln2_b": jnp.zeros((1, C), jnp.float32),
            "w_fc": normal(k2, (4 * C, C), std).T.astype(jnp.bfloat16),
            "b_fc": jnp.zeros((1, 4 * C), jnp.float32),
            "w_mp": normal(k3, (C, 4 * C), proj_std).T.astype(jnp.bfloat16),
            "b_mp": jnp.zeros((1, C), jnp.float32),
        }
        params["layers"].append(layer)
    return params


# --------------------------------- forward -----------------------------------

def gpt_forward(idx, params, *, n_head, vocab_size):
    """idx: int32 (B, T).  Returns logits (B, T, vocab) in float32."""
    B, T = idx.shape
    C = params["wte"].shape[1]
    nh = n_head
    hd = C // nh

    tok_emb = jnp.take(params["wte"], idx, axis=0)          # (B, T, C) f32
    pos_emb = params["wpe"][:T][None, :, :]
    x = tok_emb + pos_emb                                    # embd dropout = identity

    for lp in params["layers"]:
        q, kT, v = run_qkv(x, lp, nh, hd)                    # head-layout Q/K^T/V, bf16
        x = run_attn(x, q, kT, v, lp)                        # attn + proj + residual-1
        x = run_mlp(x, lp)                                   # LN2 + MLP + residual-2

    return run_lm_head(x, params["lnf_w"], params["lnf_b"],
                       params["w_head_t"], vocab_size)


# ----------------------------------- main ------------------------------------

if __name__ == "__main__":
    # Small GPT config (params-given path of the module).
    n_layer = 2
    n_head = 4
    n_embd = 64
    vocab_size = 128
    block_size = 16

    B, T = 2, 8

    key = jax.random.PRNGKey(0)
    pkey, ikey = jax.random.split(key)
    params = init_params(pkey, n_layer=n_layer, n_head=n_head, n_embd=n_embd,
                         vocab_size=vocab_size, block_size=block_size)

    idx = jax.random.randint(ikey, (B, T), 0, vocab_size, dtype=jnp.int32)

    fwd = jax.jit(functools.partial(gpt_forward, n_head=n_head,
                                    vocab_size=vocab_size))
    logits = jax.block_until_ready(fwd(idx, params))

    assert logits.shape == (B, T, vocab_size)
    assert bool(jnp.all(jnp.isfinite(logits)))
    print("KERNEL_OK")
</pallas_src>

<mosaic_0001>
module attributes {stable_mosaic.version = 11 : i64} {
  func.func @attn_kernel(%arg0: i32, %arg1: i32, %arg2: i32, %arg3: memref<1x8x64xf32, #tpu.memory_space<vmem>>, %arg4: memref<1x4x8x16xbf16, #tpu.memory_space<vmem>>, %arg5: memref<1x4x16x8xbf16, #tpu.memory_space<vmem>>, %arg6: memref<1x4x8x16xbf16, #tpu.memory_space<vmem>>, %arg7: memref<64x64xbf16, #tpu.memory_space<vmem>>, %arg8: memref<1x64xf32, #tpu.memory_space<vmem>>, %arg9: memref<1x8x64xf32, #tpu.memory_space<vmem>>, %arg10: memref<4x8x1xf32, #tpu.memory_space<vmem>>, %arg11: memref<4x8x1xf32, #tpu.memory_space<vmem>>, %arg12: memref<4x8x16xf32, #tpu.memory_space<vmem>>) attributes {dimension_semantics = [#tpu.dimension_semantics<parallel>, #tpu.dimension_semantics<parallel>, #tpu.dimension_semantics<arbitrary>], iteration_bounds = array<i64: 2, 1, 1>, scalar_prefetch = 0 : i64, scratch_operands = 3 : i64, tpu.core_type = #tpu.core_type<tc>, window_params = [{transform_indices = @transform_0, window_bounds = array<i64: 1, 8, 64>}, {transform_indices = @transform_1, window_bounds = array<i64: 1, 4, 8, 16>}, {transform_indices = @transform_2, window_bounds = array<i64: 1, 4, 16, 8>}, {transform_indices = @transform_3, window_bounds = array<i64: 1, 4, 8, 16>}, {pipeline_mode = #tpu.pipeline_mode<synchronous>, transform_indices = @transform_4, window_bounds = array<i64: 64, 64>}, {pipeline_mode = #tpu.pipeline_mode<synchronous>, transform_indices = @transform_5, window_bounds = array<i64: 1, 64>}, {transform_indices = @transform_6, window_bounds = array<i64: 1, 8, 64>}]} {
    %c0_i32 = arith.constant 0 : i32
    %0 = arith.cmpi eq, %arg2, %c0_i32 : i32
    %1 = arith.extui %0 : i1 to i32
    %c0_i32_0 = arith.constant 0 : i32
    %2 = arith.cmpi ne, %1, %c0_i32_0 : i32
    scf.if %2 {
      %cst = arith.constant 0xFF800000 : f32
      %12 = vector.broadcast %cst : f32 to vector<4x8x1xf32>
      %c0 = arith.constant 0 : index
      %c0_5 = arith.constant 0 : index
      %c0_6 = arith.constant 0 : index
      %13 = vector.load %arg10[%c0, %c0_5, %c0_6] : memref<4x8x1xf32, #tpu.memory_space<vmem>>, vector<4x8x1xf32>
      tpu.vector_store %arg10[%c0, %c0_5, %c0_6], %12 {strides = array<i32>} : memref<4x8x1xf32, #tpu.memory_space<vmem>>, vector<4x8x1xf32>,
      %cst_7 = arith.constant 0.000000e+00 : f32
      %14 = vector.broadcast %cst_7 : f32 to vector<4x8x1xf32>
      %c0_8 = arith.constant 0 : index
      %c0_9 = arith.constant 0 : index
      %c0_10 = arith.constant 0 : index
      %15 = vector.load %arg11[%c0_8, %c0_9, %c0_10] : memref<4x8x1xf32, #tpu.memory_space<vmem>>, vector<4x8x1xf32>
      tpu.vector_store %arg11[%c0_8, %c0_9, %c0_10], %14 {strides = array<i32>} : memref<4x8x1xf32, #tpu.memory_space<vmem>>, vector<4x8x1xf32>,
      %cst_11 = arith.constant 0.000000e+00 : f32
      %16 = vector.broadcast %cst_11 : f32 to vector<4x8x16xf32>
      %c0_12 = arith.constant 0 : index
      %c0_13 = arith.constant 0 : index
      %c0_14 = arith.constant 0 : index
      %17 = vector.load %arg12[%c0_12, %c0_13, %c0_14] : memref<4x8x16xf32, #tpu.memory_space<vmem>>, vector<4x8x16xf32>
      tpu.vector_store %arg12[%c0_12, %c0_13, %c0_14], %16 {strides = array<i32>} : memref<4x8x16xf32, #tpu.memory_space<vmem>>, vector<4x8x16xf32>,
    } else {
    }
    %c8_i32 = arith.constant 8 : i32
    %3 = arith.muli %arg2, %c8_i32 : i32
    %c1_i32 = arith.constant 1 : i32
    %4 = arith.addi %arg1, %c1_i32 : i32
    %c8_i32_1 = arith.constant 8 : i32
    %5 = arith.muli %4, %c8_i32_1 : i32
    %6 = arith.cmpi slt, %3, %5 : i32
    %7 = arith.extui %6 : i1 to i32
    %c0_i32_2 = arith.constant 0 : i32
    %8 = arith.cmpi ne, %7, %c0_i32_2 : i32
    scf.if %8 {
      %c0 = arith.constant 0 : index
      %c0_5 = arith.constant 0 : index
      %c0_6 = arith.constant 0 : index
      %c0_7 = arith.constant 0 : index
      %12 = vector.load %arg4[%c0, %c0_5, %c0_6, %c0_7] : memref<1x4x8x16xbf16, #tpu.memory_space<vmem>>, vector<1x4x8x16xbf16>
      %13 = vector.shape_cast %12 : vector<1x4x8x16xbf16> to vector<4x8x16xbf16>
      %c0_8 = arith.constant 0 : index
      %c0_9 = arith.constant 0 : index
      %c0_10 = arith.constant 0 : index
      %c0_11 = arith.constant 0 : index
      %14 = vector.load %arg5[%c0_8, %c0_9, %c0_10, %c0_11] : memref<1x4x16x8xbf16, #tpu.memory_space<vmem>>, vector<1x4x16x8xbf16>
      %15 = vector.shape_cast %14 : vector<1x4x16x8xbf16> to vector<4x16x8xbf16>
      %c0_12 = arith.constant 0 : index
      %c0_13 = arith.constant 0 : index
      %c0_14 = arith.constant 0 : index
      %c0_15 = arith.constant 0 : index
      %16 = vector.load %arg6[%c0_12, %c0_13, %c0_14, %c0_15] : memref<1x4x8x16xbf16, #tpu.memory_space<vmem>>, vector<1x4x8x16xbf16>
      %17 = vector.shape_cast %16 : vector<1x4x8x16xbf16> to vector<4x8x16xbf16>
      "tpu.trace_start"() <{level = 10 : i32, message = "hqd,hdk->hqk"}> : () -> ()
      %cst = arith.constant dense<0.000000e+00> : vector<4x8x8xf32>
      %18 = tpu.matmul %13, %15, %cst {dimension_numbers = #tpu.dot_dimension_numbers<[2], [1], [1], [2], [0, 0, 0, 1, 1, 2], [0], [0]>} : vector<4x8x16xbf16>, vector<4x16x8xbf16>, vector<4x8x8xf32> -> vector<4x8x8xf32>
      "tpu.trace_stop"() : () -> ()
      %cst_16 = arith.constant 2.500000e-01 : f32
      %19 = vector.broadcast %cst_16 : f32 to vector<4x8x8xf32>
      %20 = arith.mulf %18, %19 : vector<4x8x8xf32>
      %c8_i32_17 = arith.constant 8 : i32
      %21 = arith.muli %arg1, %c8_i32_17 : i32
      %22 = tpu.iota {dimensions = array<i32: 0>} : vector<8x8xi32>
      %23 = vector.broadcast %21 : i32 to vector<8x8xi32>
      %24 = arith.addi %23, %22 : vector<8x8xi32>
      %c8_i32_18 = arith.constant 8 : i32
      %25 = arith.muli %arg2, %c8_i32_18 : i32
      %26 = tpu.iota {dimensions = array<i32: 1>} : vector<8x8xi32>
      %27 = vector.broadcast %25 : i32 to vector<8x8xi32>
      %28 = arith.addi %27, %26 : vector<8x8xi32>
      %29 = arith.cmpi sle, %28, %24 : vector<8x8xi32>
      %30 = vector.shape_cast %29 : vector<8x8xi1> to vector<1x8x8xi1>
      %cst_19 = arith.constant -1.000000e+30 : f32
      %31 = vector.shape_cast %30 : vector<1x8x8xi1> to vector<1x8x8xi1>
      %32 = vector.broadcast %31 : vector<1x8x8xi1> to vector<4x8x8xi1>
      %33 = vector.broadcast %cst_19 : f32 to vector<4x8x8xf32>
      %34 = arith.select %32, %20, %33 : vector<4x8x8xi1>, vector<4x8x8xf32>
      %c0_20 = arith.constant 0 : index
      %c0_21 = arith.constant 0 : index
      %c0_22 = arith.constant 0 : index
      %35 = vector.load %arg10[%c0_20, %c0_21, %c0_22] : memref<4x8x1xf32, #tpu.memory_space<vmem>>, vector<4x8x1xf32>
      %cst_23 = arith.constant dense<0xFF800000> : vector<4x8xf32>
      %36 = vector.multi_reduction <maximumf>, %34, %cst_23 [2] : vector<4x8x8xf32> to vector<4x8xf32>
      %37 = vector.shape_cast %36 : vector<4x8xf32> to vector<4x8x1xf32>
      %38 = arith.maximumf %35, %37 : vector<4x8x1xf32>
      %39 = arith.subf %35, %38 : vector<4x8x1xf32>
      %40 = math.exp %39 : vector<4x8x1xf32>
      %41 = vector.broadcast %38 : vector<4x8x1xf32> to vector<4x8x8xf32>
      %42 = arith.subf %34, %41 : vector<4x8x8xf32>
      %43 = math.exp %42 : vector<4x8x8xf32>
      %c0_24 = arith.constant 0 : index
      %c0_25 = arith.constant 0 : index
      %c0_26 = arith.constant 0 : index
      %44 = vector.load %arg11[%c0_24, %c0_25, %c0_26] : memref<4x8x1xf32, #tpu.memory_space<vmem>>, vector<4x8x1xf32>
      %45 = arith.mulf %40, %44 : vector<4x8x1xf32>
      %cst_27 = arith.constant dense<0.000000e+00> : vector<4x8xf32>
      %46 = vector.multi_reduction <add>, %43, %cst_27 [2] : vector<4x8x8xf32> to vector<4x8xf32>
      %47 = vector.shape_cast %46 : vector<4x8xf32> to vector<4x8x1xf32>
      %48 = arith.addf %45, %47 : vector<4x8x1xf32>
      %c0_28 = arith.constant 0 : index
      %c0_29 = arith.constant 0 : index
      %c0_30 = arith.constant 0 : index
      %49 = vector.load %arg11[%c0_28, %c0_29, %c0_30] : memref<4x8x1xf32, #tpu.memory_space<vmem>>, vector<4x8x1xf32>
      tpu.vector_store %arg11[%c0_28, %c0_29, %c0_30], %48 {strides = array<i32>} : memref<4x8x1xf32, #tpu.memory_space<vmem>>, vector<4x8x1xf32>,
      %c0_31 = arith.constant 0 : index
      %c0_32 = arith.constant 0 : index
      %c0_33 = arith.constant 0 : index
      %50 = vector.load %arg12[%c0_31, %c0_32, %c0_33] : memref<4x8x16xf32, #tpu.memory_space<vmem>>, vector<4x8x16xf32>
      %51 = vector.broadcast %40 : vector<4x8x1xf32> to vector<4x8x16xf32>
      %52 = arith.mulf %51, %50 : vector<4x8x16xf32>
      %53 = arith.truncf %43 : vector<4x8x8xf32> to vector<4x8x8xbf16>
      "tpu.trace_start"() <{level = 10 : i32, message = "hqk,hkd->hqd"}> : () -> ()
      %cst_34 = arith.constant dense<0.000000e+00> : vector<4x8x16xf32>
      %54 = tpu.matmul %53, %17, %cst_34 {dimension_numbers = #tpu.dot_dimension_numbers<[2], [1], [1], [2], [0, 0, 0, 1, 1, 2], [0], [0]>} : vector<4x8x8xbf16>, vector<4x8x16xbf16>, vector<4x8x16xf32> -> vector<4x8x16xf32>
      "tpu.trace_stop"() : () -> ()
      %55 = arith.addf %52, %54 : vector<4x8x16xf32>
      %c0_35 = arith.constant 0 : index
      %c0_36 = arith.constant 0 : index
      %c0_37 = arith.constant 0 : index
      %56 = vector.load %arg12[%c0_35, %c0_36, %c0_37] : memref<4x8x16xf32, #tpu.memory_space<vmem>>, vector<4x8x16xf32>
      tpu.vector_store %arg12[%c0_35, %c0_36, %c0_37], %55 {strides = array<i32>} : memref<4x8x16xf32, #tpu.memory_space<vmem>>, vector<4x8x16xf32>,
      %c0_38 = arith.constant 0 : index
      %c0_39 = arith.constant 0 : index
      %c0_40 = arith.constant 0 : index
      %57 = vector.load %arg10[%c0_38, %c0_39, %c0_40] : memref<4x8x1xf32, #tpu.memory_space<vmem>>, vector<4x8x1xf32>
      tpu.vector_store %arg10[%c0_38, %c0_39, %c0_40], %38 {strides = array<i32>} : memref<4x8x1xf32, #tpu.memory_space<vmem>>, vector<4x8x1xf32>,
    } else {
    }
    %c0_i32_3 = arith.constant 0 : i32
    %9 = arith.cmpi eq, %arg2, %c0_i32_3 : i32
    %10 = arith.extui %9 : i1 to i32
    %c0_i32_4 = arith.constant 0 : i32
    %11 = arith.cmpi ne, %10, %c0_i32_4 : i32
    scf.if %11 {
      %c0 = arith.constant 0 : index
      %c0_5 = arith.constant 0 : index
      %c0_6 = arith.constant 0 : index
      %12 = vector.load %arg12[%c0, %c0_5, %c0_6] : memref<4x8x16xf32, #tpu.memory_space<vmem>>, vector<4x8x16xf32>
      %c0_7 = arith.constant 0 : index
      %c0_8 = arith.constant 0 : index
      %c0_9 = arith.constant 0 : index
      %13 = vector.load %arg11[%c0_7, %c0_8, %c0_9] : memref<4x8x1xf32, #tpu.memory_space<vmem>>, vector<4x8x1xf32>
      %14 = tpu.reciprocal %13 : vector<4x8x1xf32> -> vector<4x8x1xf32>
      %15 = vector.broadcast %14 : vector<4x8x1xf32> to vector<4x8x16xf32>
      %16 = arith.mulf %12, %15 : vector<4x8x16xf32>
      %17 = vector.extract_strided_slice %16 {offsets = [0, 0, 0], sizes = [1, 8, 16], strides = [1, 1, 1]} : vector<4x8x16xf32> to vector<1x8x16xf32>
      %18 = vector.shape_cast %17 : vector<1x8x16xf32> to vector<8x16xf32>
      %19 = vector.extract_strided_slice %16 {offsets = [1, 0, 0], sizes = [1, 8, 16], strides = [1, 1, 1]} : vector<4x8x16xf32> to vector<1x8x16xf32>
      %20 = vector.shape_cast %19 : vector<1x8x16xf32> to vector<8x16xf32>
      %21 = vector.extract_strided_slice %16 {offsets = [2, 0, 0], sizes = [1, 8, 16], strides = [1, 1, 1]} : vector<4x8x16xf32> to vector<1x8x16xf32>
      %22 = vector.shape_cast %21 : vector<1x8x16xf32> to vector<8x16xf32>
      %23 = vector.extract_strided_slice %16 {offsets = [3, 0, 0], sizes = [1, 8, 16], strides = [1, 1, 1]} : vector<4x8x16xf32> to vector<1x8x16xf32>
      %24 = vector.shape_cast %23 : vector<1x8x16xf32> to vector<8x16xf32>
      %25 = tpu.concatenate %18, %20, %22, %24 in 1 : vector<8x16xf32>, vector<8x16xf32>, vector<8x16xf32>, vector<8x16xf32> -> vector<8x64xf32>
      %26 = arith.truncf %25 : vector<8x64xf32> to vector<8x64xbf16>
      %c0_10 = arith.constant 0 : index
      %c0_11 = arith.constant 0 : index
      %27 = vector.load %arg7[%c0_10, %c0_11] : memref<64x64xbf16, #tpu.memory_space<vmem>>, vector<64x64xbf16>
      %cst = arith.constant dense<0.000000e+00> : vector<8x64xf32>
      %28 = tpu.matmul %26, %27, %cst {dimension_numbers = #tpu.dot_dimension_numbers<[1], [0], [0], [1], [0, 0, 1, 1], [], []>} : vector<8x64xbf16>, vector<64x64xbf16>, vector<8x64xf32> -> vector<8x64xf32>
      %c0_12 = arith.constant 0 : index
      %c0_13 = arith.constant 0 : index
      %29 = vector.load %arg8[%c0_12, %c0_13] : memref<1x64xf32, #tpu.memory_space<vmem>>, vector<1x64xf32>
      %30 = vector.broadcast %29 : vector<1x64xf32> to vector<8x64xf32>
      %31 = arith.addf %28, %30 : vector<8x64xf32>
      %c0_14 = arith.constant 0 : index
      %c0_15 = arith.constant 0 : index
      %c0_16 = arith.constant 0 : index
      %32 = vector.load %arg3[%c0_14, %c0_15, %c0_16] : memref<1x8x64xf32, #tpu.memory_space<vmem>>, vector<1x8x64xf32>
      %33 = vector.shape_cast %32 : vector<1x8x64xf32> to vector<8x64xf32>
      %34 = arith.addf %33, %31 : vector<8x64xf32>
      %c0_17 = arith.constant 0 : index
      %c0_18 = arith.constant 0 : index
      %c0_19 = arith.constant 0 : index
      %35 = vector.load %arg9[%c0_17, %c0_18, %c0_19] : memref<1x8x64xf32, #tpu.memory_space<vmem>>, vector<1x8x64xf32>
      %36 = vector.shape_cast %35 : vector<1x8x64xf32> to vector<8x64xf32>
      %37 = vector.shape_cast %34 : vector<8x64xf32> to vector<1x8x64xf32>
      tpu.vector_store %arg9[%c0_17, %c0_18, %c0_19], %37 {strides = array<i32>} : memref<1x8x64xf32, #tpu.memory_space<vmem>>, vector<1x8x64xf32>,
    } else {
    }
    return
  }
  func.func @transform_0(%arg0: i32, %arg1: i32, %arg2: i32) -> (i32, i32, i32) {
    %c0_i32 = arith.constant 0 : i32
    %c0_i32_0 = arith.constant 0 : i32
    return %arg0, %arg1, %c0_i32 : i32, i32, i32
  }
  func.func @transform_1(%arg0: i32, %arg1: i32, %arg2: i32) -> (i32, i32, i32, i32) {
    %c0_i32 = arith.constant 0 : i32
    %c0_i32_0 = arith.constant 0 : i32
    %c0_i32_1 = arith.constant 0 : i32
    return %arg0, %c0_i32, %arg1, %c0_i32_0 : i32, i32, i32, i32
  }
  func.func @transform_2(%arg0: i32, %arg1: i32, %arg2: i32) -> (i32, i32, i32, i32) {
    %c0_i32 = arith.constant 0 : i32
    %c0_i32_0 = arith.constant 0 : i32
    %c0_i32_1 = arith.constant 0 : i32
    return %arg0, %c0_i32, %c0_i32_0, %arg2 : i32, i32, i32, i32
  }
  func.func @transform_3(%arg0: i32, %arg1: i32, %arg2: i32) -> (i32, i32, i32, i32) {
    %c0_i32 = arith.constant 0 : i32
    %c0_i32_0 = arith.constant 0 : i32
    %c0_i32_1 = arith.constant 0 : i32
    return %arg0, %c0_i32, %arg2, %c0_i32_0 : i32, i32, i32, i32
  }
  func.func @transform_4(%arg0: i32, %arg1: i32, %arg2: i32) -> (i32, i32) {
    %c0_i32 = arith.constant 0 : i32
    %c0_i32_0 = arith.constant 0 : i32
    %c0_i32_1 = arith.constant 0 : i32
    return %c0_i32, %c0_i32_0 : i32, i32
  }
  func.func @transform_5(%arg0: i32, %arg1: i32, %arg2: i32) -> (i32, i32) {
    %c0_i32 = arith.constant 0 : i32
    %c0_i32_0 = arith.constant 0 : i32
    %c0_i32_1 = arith.constant 0 : i32
    return %c0_i32, %c0_i32_0 : i32, i32
  }
  func.func @transform_6(%arg0: i32, %arg1: i32, %arg2: i32) -> (i32, i32, i32) {
    %c0_i32 = arith.constant 0 : i32
    %c0_i32_0 = arith.constant 0 : i32
    return %arg0, %arg1, %c0_i32 : i32, i32, i32
  }
}

module attributes {stable_mosaic.version = 11 : i64} {
  func.func @qkv_kernel(%arg0: i32, %arg1: i32, %arg2: memref<1x8x64xf32, #tpu.memory_space<vmem>>, %arg3: memref<1x64xf32, #tpu.memory_space<vmem>>, %arg4: memref<1x64xf32, #tpu.memory_space<vmem>>, %arg5: memref<64x64xbf16, #tpu.memory_space<vmem>>, %arg6: memref<64x64xbf16, #tpu.memory_space<vmem>>, %arg7: memref<64x64xbf16, #tpu.memory_space<vmem>>, %arg8: memref<1x64xf32, #tpu.memory_space<vmem>>, %arg9: memref<1x64xf32, #tpu.memory_space<vmem>>, %arg10: memref<1x64xf32, #tpu.memory_space<vmem>>, %arg11: memref<1x4x8x16xbf16, #tpu.memory_space<vmem>>, %arg12: memref<1x4x16x8xbf16, #tpu.memory_space<vmem>>, %arg13: memref<1x4x8x16xbf16, #tpu.memory_space<vmem>>) attributes {dimension_semantics = [#tpu.dimension_semantics<parallel>, #tpu.dimension_semantics<parallel>], iteration_bounds = array<i64: 2, 1>, scalar_prefetch = 0 : i64, scratch_operands = 0 : i64, tpu.core_type = #tpu.core_type<tc>, window_params = [{transform_indices = @transform_0, window_bounds = array<i64: 1, 8, 64>}, {pipeline_mode = #tpu.pipeline_mode<synchronous>, transform_indices = @transform_1, window_bounds = array<i64: 1, 64>}, {pipeline_mode = #tpu.pipeline_mode<synchronous>, transform_indices = @transform_2, window_bounds = array<i64: 1, 64>}, {pipeline_mode = #tpu.pipeline_mode<synchronous>, transform_indices = @transform_3, window_bounds = array<i64: 64, 64>}, {pipeline_mode = #tpu.pipeline_mode<synchronous>, transform_indices = @transform_4, window_bounds = array<i64: 64, 64>}, {pipeline_mode = #tpu.pipeline_mode<synchronous>, transform_indices = @transform_5, window_bounds = array<i64: 64, 64>}, {pipeline_mode = #tpu.pipeline_mode<synchronous>, transform_indices = @transform_6, window_bounds = array<i64: 1, 64>}, {pipeline_mode = #tpu.pipeline_mode<synchronous>, transform_indices = @transform_7, window_bounds = array<i64: 1, 64>}, {pipeline_mode = #tpu.pipeline_mode<synchronous>, transform_indices = @transform_8, window_bounds = array<i64: 1, 64>}, {transform_indices = @transform_9, window_bounds = array<i64: 1, 4, 8, 16>}, {transform_indices = @transform_10, window_bounds = array<i64: 1, 4, 16, 8>}, {transform_indices = @transform_11, window_bounds = array<i64: 1, 4, 8, 16>}]} {
    %c0 = arith.constant 0 : index
    %c0_0 = arith.constant 0 : index
    %c0_1 = arith.constant 0 : index
    %0 = vector.load %arg2[%c0, %c0_0, %c0_1] : memref<1x8x64xf32, #tpu.memory_space<vmem>>, vector<1x8x64xf32>
    %1 = vector.shape_cast %0 : vector<1x8x64xf32> to vector<8x64xf32>
    %c0_2 = arith.constant 0 : index
    %c0_3 = arith.constant 0 : index
    %2 = vector.load %arg3[%c0_2, %c0_3] : memref<1x64xf32, #tpu.memory_space<vmem>>, vector<1x64xf32>
    %c0_4 = arith.constant 0 : index
    %c0_5 = arith.constant 0 : index
    %3 = vector.load %arg4[%c0_4, %c0_5] : memref<1x64xf32, #tpu.memory_space<vmem>>, vector<1x64xf32>
    %cst = arith.constant dense<0.000000e+00> : vector<8xf32>
    %4 = vector.multi_reduction <add>, %1, %cst [1] : vector<8x64xf32> to vector<8xf32>
    %5 = vector.shape_cast %4 : vector<8xf32> to vector<8x1xf32>
    %cst_6 = arith.constant 6.400000e+01 : f32
    %6 = vector.broadcast %cst_6 : f32 to vector<8x1xf32>
    %7 = arith.divf %5, %6 : vector<8x1xf32>
    %8 = vector.broadcast %7 : vector<8x1xf32> to vector<8x64xf32>
    %9 = arith.subf %1, %8 : vector<8x64xf32>
    %10 = arith.mulf %9, %9 : vector<8x64xf32>
    %cst_7 = arith.constant dense<0.000000e+00> : vector<8xf32>
    %11 = vector.multi_reduction <add>, %10, %cst_7 [1] : vector<8x64xf32> to vector<8xf32>
    %12 = vector.shape_cast %11 : vector<8xf32> to vector<8x1xf32>
    %cst_8 = arith.constant 6.400000e+01 : f32
    %13 = vector.broadcast %cst_8 : f32 to vector<8x1xf32>
    %14 = arith.divf %12, %13 : vector<8x1xf32>
    %15 = vector.broadcast %7 : vector<8x1xf32> to vector<8x64xf32>
    %16 = arith.subf %1, %15 : vector<8x64xf32>
    %cst_9 = arith.constant 9.99999974E-6 : f32
    %17 = vector.broadcast %cst_9 : f32 to vector<8x1xf32>
    %18 = arith.addf %14, %17 : vector<8x1xf32>
    %19 = math.rsqrt %18 : vector<8x1xf32>
    %20 = vector.broadcast %19 : vector<8x1xf32> to vector<8x64xf32>
    %21 = arith.mulf %16, %20 : vector<8x64xf32>
    %22 = vector.broadcast %2 : vector<1x64xf32> to vector<8x64xf32>
    %23 = arith.mulf %21, %22 : vector<8x64xf32>
    %24 = vector.broadcast %3 : vector<1x64xf32> to vector<8x64xf32>
    %25 = arith.addf %23, %24 : vector<8x64xf32>
    %26 = arith.truncf %25 : vector<8x64xf32> to vector<8x64xbf16>
    %c0_10 = arith.constant 0 : index
    %c0_11 = arith.constant 0 : index
    %27 = vector.load %arg5[%c0_10, %c0_11] : memref<64x64xbf16, #tpu.memory_space<vmem>>, vector<64x64xbf16>
    %cst_12 = arith.constant dense<0.000000e+00> : vector<8x64xf32>
    %28 = tpu.matmul %26, %27, %cst_12 {dimension_numbers = #tpu.dot_dimension_numbers<[1], [0], [0], [1], [0, 0, 1, 1], [], []>} : vector<8x64xbf16>, vector<64x64xbf16>, vector<8x64xf32> -> vector<8x64xf32>
    %c0_13 = arith.constant 0 : index
    %c0_14 = arith.constant 0 : index
    %29 = vector.load %arg8[%c0_13, %c0_14] : memref<1x64xf32, #tpu.memory_space<vmem>>, vector<1x64xf32>
    %30 = vector.broadcast %29 : vector<1x64xf32> to vector<8x64xf32>
    %31 = arith.addf %28, %30 : vector<8x64xf32>
    %c0_15 = arith.constant 0 : index
    %c0_16 = arith.constant 0 : index
    %32 = vector.load %arg6[%c0_15, %c0_16] : memref<64x64xbf16, #tpu.memory_space<vmem>>, vector<64x64xbf16>
    %cst_17 = arith.constant dense<0.000000e+00> : vector<8x64xf32>
    %33 = tpu.matmul %26, %32, %cst_17 {dimension_numbers = #tpu.dot_dimension_numbers<[1], [0], [0], [1], [0, 0, 1, 1], [], []>} : vector<8x64xbf16>, vector<64x64xbf16>, vector<8x64xf32> -> vector<8x64xf32>
    %c0_18 = arith.constant 0 : index
    %c0_19 = arith.constant 0 : index
    %34 = vector.load %arg9[%c0_18, %c0_19] : memref<1x64xf32, #tpu.memory_space<vmem>>, vector<1x64xf32>
    %35 = vector.broadcast %34 : vector<1x64xf32> to vector<8x64xf32>
    %36 = arith.addf %33, %35 : vector<8x64xf32>
    %c0_20 = arith.constant 0 : index
    %c0_21 = arith.constant 0 : index
    %37 = vector.load %arg7[%c0_20, %c0_21] : memref<64x64xbf16, #tpu.memory_space<vmem>>, vector<64x64xbf16>
    %cst_22 = arith.constant dense<0.000000e+00> : vector<8x64xf32>
    %38 = tpu.matmul %26, %37, %cst_22 {dimension_numbers = #tpu.dot_dimension_numbers<[1], [0], [0], [1], [0, 0, 1, 1], [], []>} : vector<8x64xbf16>, vector<64x64xbf16>, vector<8x64xf32> -> vector<8x64xf32>
    %c0_23 = arith.constant 0 : index
    %c0_24 = arith.constant 0 : index
    %39 = vector.load %arg10[%c0_23, %c0_24] : memref<1x64xf32, #tpu.memory_space<vmem>>, vector<1x64xf32>
    %40 = vector.broadcast %39 : vector<1x64xf32> to vector<8x64xf32>
    %41 = arith.addf %38, %40 : vector<8x64xf32>
    %42 = arith.truncf %31 : vector<8x64xf32> to vector<8x64xbf16>
    %43 = tpu.transpose %36, [1, 0] : vector<8x64xf32> -> vector<64x8xf32>
    %44 = arith.truncf %43 : vector<64x8xf32> to vector<64x8xbf16>
    %45 = arith.truncf %41 : vector<8x64xf32> to vector<8x64xbf16>
    %46 = vector.extract_strided_slice %42 {offsets = [0, 0], sizes = [8, 16], strides = [1, 1]} : vector<8x64xbf16> to vector<8x16xbf16>
    %c0_25 = arith.constant 0 : index
    %c0_26 = arith.constant 0 : index
    %c0_27 = arith.constant 0 : index
    %c0_28 = arith.constant 0 : index
    %47 = vector.load %arg11[%c0_25, %c0_26, %c0_27, %c0_28] : memref<1x4x8x16xbf16, #tpu.memory_space<vmem>>, vector<1x1x8x16xbf16>
    %48 = vector.shape_cast %47 : vector<1x1x8x16xbf16> to vector<8x16xbf16>
    %49 = vector.shape_cast %46 : vector<8x16xbf16> to vector<1x1x8x16xbf16>
    tpu.vector_store %arg11[%c0_25, %c0_26, %c0_27, %c0_28], %49 {strides = array<i32>} : memref<1x4x8x16xbf16, #tpu.memory_space<vmem>>, vector<1x1x8x16xbf16>,
    %50 = vector.extract_strided_slice %44 {offsets = [0, 0], sizes = [16, 8], strides = [1, 1]} : vector<64x8xbf16> to vector<16x8xbf16>
    %c0_29 = arith.constant 0 : index
    %c0_30 = arith.constant 0 : index
    %c0_31 = arith.constant 0 : index
    %c0_32 = arith.constant 0 : index
    %51 = vector.load %arg12[%c0_29, %c0_30, %c0_31, %c0_32] : memref<1x4x16x8xbf16, #tpu.memory_space<vmem>>, vector<1x1x16x8xbf16>
    %52 = vector.shape_cast %51 : vector<1x1x16x8xbf16> to vector<16x8xbf16>
    %53 = vector.shape_cast %50 : vector<16x8xbf16> to vector<1x1x16x8xbf16>
    tpu.vector_store %arg12[%c0_29, %c0_30, %c0_31, %c0_32], %53 {strides = array<i32>} : memref<1x4x16x8xbf16, #tpu.memory_space<vmem>>, vector<1x1x16x8xbf16>,
    %54 = vector.extract_strided_slice %45 {offsets = [0, 0], sizes = [8, 16], strides = [1, 1]} : vector<8x64xbf16> to vector<8x16xbf16>
    %c0_33 = arith.constant 0 : index
    %c0_34 = arith.constant 0 : index
    %c0_35 = arith.constant 0 : index
    %c0_36 = arith.constant 0 : index
    %55 = vector.load %arg13[%c0_33, %c0_34, %c0_35, %c0_36] : memref<1x4x8x16xbf16, #tpu.memory_space<vmem>>, vector<1x1x8x16xbf16>
    %56 = vector.shape_cast %55 : vector<1x1x8x16xbf16> to vector<8x16xbf16>
    %57 = vector.shape_cast %54 : vector<8x16xbf16> to vector<1x1x8x16xbf16>
    tpu.vector_store %arg13[%c0_33, %c0_34, %c0_35, %c0_36], %57 {strides = array<i32>} : memref<1x4x8x16xbf16, #tpu.memory_space<vmem>>, vector<1x1x8x16xbf16>,
    %58 = vector.extract_strided_slice %42 {offsets = [0, 16], sizes = [8, 16], strides = [1, 1]} : vector<8x64xbf16> to vector<8x16xbf16>
    %c0_37 = arith.constant 0 : index
    %c1 = arith.constant 1 : index
    %c0_38 = arith.constant 0 : index
    %c0_39 = arith.constant 0 : index
    %59 = vector.load %arg11[%c0_37, %c1, %c0_38, %c0_39] : memref<1x4x8x16xbf16, #tpu.memory_space<vmem>>, vector<1x1x8x16xbf16>
    %60 = vector.shape_cast %59 : vector<1x1x8x16xbf16> to vector<8x16xbf16>
    %61 = vector.shape_cast %58 : vector<8x16xbf16> to vector<1x1x8x16xbf16>
    tpu.vector_store %arg11[%c0_37, %c1, %c0_38, %c0_39], %61 {strides = array<i32>} : memref<1x4x8x16xbf16, #tpu.memory_space<vmem>>, vector<1x1x8x16xbf16>,
    %62 = vector.extract_strided_slice %44 {offsets = [16, 0], sizes = [16, 8], strides = [1, 1]} : vector<64x8xbf16> to vector<16x8xbf16>
    %c0_40 = arith.constant 0 : index
    %c1_41 = arith.constant 1 : index
    %c0_42 = arith.constant 0 : index
    %c0_43 = arith.constant 0 : index
    %63 = vector.load %arg12[%c0_40, %c1_41, %c0_42, %c0_43] : memref<1x4x16x8xbf16, #tpu.memory_space<vmem>>, vector<1x1x16x8xbf16>
    %64 = vector.shape_cast %63 : vector<1x1x16x8xbf16> to vector<16x8xbf16>
    %65 = vector.shape_cast %62 : vector<16x8xbf16> to vector<1x1x16x8xbf16>
    tpu.vector_store %arg12[%c0_40, %c1_41, %c0_42, %c0_43], %65 {strides = array<i32>} : memref<1x4x16x8xbf16, #tpu.memory_space<vmem>>, vector<1x1x16x8xbf16>,
    %66 = vector.extract_strided_slice %45 {offsets = [0, 16], sizes = [8, 16], strides = [1, 1]} : vector<8x64xbf16> to vector<8x16xbf16>
    %c0_44 = arith.constant 0 : index
    %c1_45 = arith.constant 1 : index
    %c0_46 = arith.constant 0 : index
    %c0_47 = arith.constant 0 : index
    %67 = vector.load %arg13[%c0_44, %c1_45, %c0_46, %c0_47] : memref<1x4x8x16xbf16, #tpu.memory_space<vmem>>, vector<1x1x8x16xbf16>
    %68 = vector.shape_cast %67 : vector<1x1x8x16xbf16> to vector<8x16xbf16>
    %69 = vector.shape_cast %66 : vector<8x16xbf16> to vector<1x1x8x16xbf16>
    tpu.vector_store %arg13[%c0_44, %c1_45, %c0_46, %c0_47], %69 {strides = array<i32>} : memref<1x4x8x16xbf16, #tpu.memory_space<vmem>>, vector<1x1x8x16xbf16>,
    %70 = vector.extract_strided_slice %42 {offsets = [0, 32], sizes = [8, 16], strides = [1, 1]} : vector<8x64xbf16> to vector<8x16xbf16>
    %c0_48 = arith.constant 0 : index
    %c2 = arith.constant 2 : index
    %c0_49 = arith.constant 0 : index
    %c0_50 = arith.constant 0 : index
    %71 = vector.load %arg11[%c0_48, %c2, %c0_49, %c0_50] : memref<1x4x8x16xbf16, #tpu.memory_space<vmem>>, vector<1x1x8x16xbf16>
    %72 = vector.shape_cast %71 : vector<1x1x8x16xbf16> to vector<8x16xbf16>
    %73 = vector.shape_cast %70 : vector<8x16xbf16> to vector<1x1x8x16xbf16>
    tpu.vector_store %arg11[%c0_48, %c2, %c0_49, %c0_50], %73 {strides = array<i32>} : memref<1x4x8x16xbf16, #tpu.memory_space<vmem>>, vector<1x1x8x16xbf16>,
    %74 = vector.extract_strided_slice %44 {offsets = [32, 0], sizes = [16, 8], strides = [1, 1]} : vector<64x8xbf16> to vector<16x8xbf16>
    %c0_51 = arith.constant 0 : index
    %c2_52 = arith.constant 2 : index
    %c0_53 = arith.constant 0 : index
    %c0_54 = arith.constant 0 : index
    %75 = vector.load %arg12[%c0_51, %c2_52, %c0_53, %c0_54] : memref<1x4x16x8xbf16, #tpu.memory_space<vmem>>, vector<1x1x16x8xbf16>
    %76 = vector.shape_cast %75 : vector<1x1x16x8xbf16> to vector<16x8xbf16>
    %77 = vector.shape_cast %74 : vector<16x8xbf16> to vector<1x1x16x8xbf16>
    tpu.vector_store %arg12[%c0_51, %c2_52, %c0_53, %c0_54], %77 {strides = array<i32>} : memref<1x4x16x8xbf16, #tpu.memory_space<vmem>>, vector<1x1x16x8xbf16>,
    %78 = vector.extract_strided_slice %45 {offsets = [0, 32], sizes = [8, 16], strides = [1, 1]} : vector<8x64xbf16> to vector<8x16xbf16>
    %c0_55 = arith.constant 0 : index
    %c2_56 = arith.constant 2 : index
    %c0_57 = arith.constant 0 : index
    %c0_58 = arith.constant 0 : index
    %79 = vector.load %arg13[%c0_55, %c2_56, %c0_57, %c0_58] : memref<1x4x8x16xbf16, #tpu.memory_space<vmem>>, vector<1x1x8x16xbf16>
    %80 = vector.shape_cast %79 : vector<1x1x8x16xbf16> to vector<8x16xbf16>
    %81 = vector.shape_cast %78 : vector<8x16xbf16> to vector<1x1x8x16xbf16>
    tpu.vector_store %arg13[%c0_55, %c2_56, %c0_57, %c0_58], %81 {strides = array<i32>} : memref<1x4x8x16xbf16, #tpu.memory_space<vmem>>, vector<1x1x8x16xbf16>,
    %82 = vector.extract_strided_slice %42 {offsets = [0, 48], sizes = [8, 16], strides = [1, 1]} : vector<8x64xbf16> to vector<8x16xbf16>
    %c0_59 = arith.constant 0 : index
    %c3 = arith.constant 3 : index
    %c0_60 = arith.constant 0 : index
    %c0_61 = arith.constant 0 : index
    %83 = vector.load %arg11[%c0_59, %c3, %c0_60, %c0_61] : memref<1x4x8x16xbf16, #tpu.memory_space<vmem>>, vector<1x1x8x16xbf16>
    %84 = vector.shape_cast %83 : vector<1x1x8x16xbf16> to vector<8x16xbf16>
    %85 = vector.shape_cast %82 : vector<8x16xbf16> to vector<1x1x8x16xbf16>
    tpu.vector_store %arg11[%c0_59, %c3, %c0_60, %c0_61], %85 {strides = array<i32>} : memref<1x4x8x16xbf16, #tpu.memory_space<vmem>>, vector<1x1x8x16xbf16>,
    %86 = vector.extract_strided_slice %44 {offsets = [48, 0], sizes = [16, 8], strides = [1, 1]} : vector<64x8xbf16> to vector<16x8xbf16>
    %c0_62 = arith.constant 0 : index
    %c3_63 = arith.constant 3 : index
    %c0_64 = arith.constant 0 : index
    %c0_65 = arith.constant 0 : index
    %87 = vector.load %arg12[%c0_62, %c3_63, %c0_64, %c0_65] : memref<1x4x16x8xbf16, #tpu.memory_space<vmem>>, vector<1x1x16x8xbf16>
    %88 = vector.shape_cast %87 : vector<1x1x16x8xbf16> to vector<16x8xbf16>
    %89 = vector.shape_cast %86 : vector<16x8xbf16> to vector<1x1x16x8xbf16>
    tpu.vector_store %arg12[%c0_62, %c3_63, %c0_64, %c0_65], %89 {strides = array<i32>} : memref<1x4x16x8xbf16, #tpu.memory_space<vmem>>, vector<1x1x16x8xbf16>,
    %90 = vector.extract_strided_slice %45 {offsets = [0, 48], sizes = [8, 16], strides = [1, 1]} : vector<8x64xbf16> to vector<8x16xbf16>
    %c0_66 = arith.constant 0 : index
    %c3_67 = arith.constant 3 : index
    %c0_68 = arith.constant 0 : index
    %c0_69 = arith.constant 0 : index
    %91 = vector.load %arg13[%c0_66, %c3_67, %c0_68, %c0_69] : memref<1x4x8x16xbf16, #tpu.memory_space<vmem>>, vector<1x1x8x16xbf16>
    %92 = vector.shape_cast %91 : vector<1x1x8x16xbf16> to vector<8x16xbf16>
    %93 = vector.shape_cast %90 : vector<8x16xbf16> to vector<1x1x8x16xbf16>
    tpu.vector_store %arg13[%c0_66, %c3_67, %c0_68, %c0_69], %93 {strides = array<i32>} : memref<1x4x8x16xbf16, #tpu.memory_space<vmem>>, vector<1x1x8x16xbf16>,
    return
  }
  func.func @transform_0(%arg0: i32, %arg1: i32) -> (i32, i32, i32) {
    %c0_i32 = arith.constant 0 : i32
    %c0_i32_0 = arith.constant 0 : i32
    return %arg0, %arg1, %c0_i32 : i32, i32, i32
  }
  func.func @transform_1(%arg0: i32, %arg1: i32) -> (i32, i32) {
    %c0_i32 = arith.constant 0 : i32
    %c0_i32_0 = arith.constant 0 : i32
    %c0_i32_1 = arith.constant 0 : i32
    return %c0_i32, %c0_i32_0 : i32, i32
  }
  func.func @transform_2(%arg0: i32, %arg1: i32) -> (i32, i32) {
    %c0_i32 = arith.constant 0 : i32
    %c0_i32_0 = arith.constant 0 : i32
    %c0_i32_1 = arith.constant 0 : i32
    return %c0_i32, %c0_i32_0 : i32, i32
  }
  func.func @transform_3(%arg0: i32, %arg1: i32) -> (i32, i32) {
    %c0_i32 = arith.constant 0 : i32
    %c0_i32_0 = arith.constant 0 : i32
    %c0_i32_1 = arith.constant 0 : i32
    return %c0_i32, %c0_i32_0 : i32, i32
  }
  func.func @transform_4(%arg0: i32, %arg1: i32) -> (i32, i32) {
    %c0_i32 = arith.constant 0 : i32
    %c0_i32_0 = arith.constant 0 : i32
    %c0_i32_1 = arith.constant 0 : i32
    return %c0_i32, %c0_i32_0 : i32, i32
  }
  func.func @transform_5(%arg0: i32, %arg1: i32) -> (i32, i32) {
    %c0_i32 = arith.constant 0 : i32
    %c0_i32_0 = arith.constant 0 : i32
    %c0_i32_1 = arith.constant 0 : i32
    return %c0_i32, %c0_i32_0 : i32, i32
  }
  func.func @transform_6(%arg0: i32, %arg1: i32) -> (i32, i32) {
    %c0_i32 = arith.constant 0 : i32
    %c0_i32_0 = arith.constant 0 : i32
    %c0_i32_1 = arith.constant 0 : i32
    return %c0_i32, %c0_i32_0 : i32, i32
  }
  func.func @transform_7(%arg0: i32, %arg1: i32) -> (i32, i32) {
    %c0_i32 = arith.constant 0 : i32
    %c0_i32_0 = arith.constant 0 : i32
    %c0_i32_1 = arith.constant 0 : i32
    return %c0_i32, %c0_i32_0 : i32, i32
  }
  func.func @transform_8(%arg0: i32, %arg1: i32) -> (i32, i32) {
    %c0_i32 = arith.constant 0 : i32
    %c0_i32_0 = arith.constant 0 : i32
    %c0_i32_1 = arith.constant 0 : i32
    return %c0_i32, %c0_i32_0 : i32, i32
  }
  func.func @transform_9(%arg0: i32, %arg1: i32) -> (i32, i32, i32, i32) {
    %c0_i32 = arith.constant 0 : i32
    %c0_i32_0 = arith.constant 0 : i32
    %c0_i32_1 = arith.constant 0 : i32
    return %arg0, %c0_i32, %arg1, %c0_i32_0 : i32, i32, i32, i32
  }
  func.func @transform_10(%arg0: i32, %arg1: i32) -> (i32, i32, i32, i32) {
    %c0_i32 = arith.constant 0 : i32
    %c0_i32_0 = arith.constant 0 : i32
    %c0_i32_1 = arith.constant 0 : i32
    return %arg0, %c0_i32, %c0_i32_0, %arg1 : i32, i32, i32, i32
  }
  func.func @transform_11(%arg0: i32, %arg1: i32) -> (i32, i32, i32, i32) {
    %c0_i32 = arith.constant 0 : i32
    %c0_i32_0 = arith.constant 0 : i32
    %c0_i32_1 = arith.constant 0 : i32
    return %arg0, %c0_i32, %arg1, %c0_i32_0 : i32, i32, i32, i32
  }
}

module attributes {stable_mosaic.version = 11 : i64} {
  func.func @mlp_kernel(%arg0: i32, %arg1: i32, %arg2: i32, %arg3: memref<1x8x64xf32, #tpu.memory_space<vmem>>, %arg4: memref<1x64xf32, #tpu.memory_space<vmem>>, %arg5: memref<1x64xf32, #tpu.memory_space<vmem>>, %arg6: memref<64x256xbf16, #tpu.memory_space<vmem>>, %arg7: memref<1x256xf32, #tpu.memory_space<vmem>>, %arg8: memref<256x64xbf16, #tpu.memory_space<vmem>>, %arg9: memref<1x64xf32, #tpu.memory_space<vmem>>, %arg10: memref<1x8x64xf32, #tpu.memory_space<vmem>>, %arg11: memref<8x64xbf16, #tpu.memory_space<vmem>>, %arg12: memref<8x64xf32, #tpu.memory_space<vmem>>) attributes {dimension_semantics = [#tpu.dimension_semantics<parallel>, #tpu.dimension_semantics<parallel>, #tpu.dimension_semantics<arbitrary>], iteration_bounds = array<i64: 2, 1, 1>, scalar_prefetch = 0 : i64, scratch_operands = 2 : i64, tpu.core_type = #tpu.core_type<tc>, window_params = [{transform_indices = @transform_0, window_bounds = array<i64: 1, 8, 64>}, {pipeline_mode = #tpu.pipeline_mode<synchronous>, transform_indices = @transform_1, window_bounds = array<i64: 1, 64>}, {pipeline_mode = #tpu.pipeline_mode<synchronous>, transform_indices = @transform_2, window_bounds = array<i64: 1, 64>}, {transform_indices = @transform_3, window_bounds = array<i64: 64, 256>}, {transform_indices = @transform_4, window_bounds = array<i64: 1, 256>}, {transform_indices = @transform_5, window_bounds = array<i64: 256, 64>}, {pipeline_mode = #tpu.pipeline_mode<synchronous>, transform_indices = @transform_6, window_bounds = array<i64: 1, 64>}, {transform_indices = @transform_7, window_bounds = array<i64: 1, 8, 64>}]} {
    %c0_i32 = arith.constant 0 : i32
    %0 = arith.cmpi eq, %arg2, %c0_i32 : i32
    %1 = arith.extui %0 : i1 to i32
    %c0_i32_0 = arith.constant 0 : i32
    %2 = arith.cmpi ne, %1, %c0_i32_0 : i32
    scf.if %2 {
      %c0_19 = arith.constant 0 : index
      %c0_20 = arith.constant 0 : index
      %c0_21 = arith.constant 0 : index
      %31 = vector.load %arg3[%c0_19, %c0_20, %c0_21] : memref<1x8x64xf32, #tpu.memory_space<vmem>>, vector<1x8x64xf32>
      %32 = vector.shape_cast %31 : vector<1x8x64xf32> to vector<8x64xf32>
      %c0_22 = arith.constant 0 : index
      %c0_23 = arith.constant 0 : index
      %33 = vector.load %arg4[%c0_22, %c0_23] : memref<1x64xf32, #tpu.memory_space<vmem>>, vector<1x64xf32>
      %c0_24 = arith.constant 0 : index
      %c0_25 = arith.constant 0 : index
      %34 = vector.load %arg5[%c0_24, %c0_25] : memref<1x64xf32, #tpu.memory_space<vmem>>, vector<1x64xf32>
      %cst_26 = arith.constant dense<0.000000e+00> : vector<8xf32>
      %35 = vector.multi_reduction <add>, %32, %cst_26 [1] : vector<8x64xf32> to vector<8xf32>
      %36 = vector.shape_cast %35 : vector<8xf32> to vector<8x1xf32>
      %cst_27 = arith.constant 6.400000e+01 : f32
      %37 = vector.broadcast %cst_27 : f32 to vector<8x1xf32>
      %38 = arith.divf %36, %37 : vector<8x1xf32>
      %39 = vector.broadcast %38 : vector<8x1xf32> to vector<8x64xf32>
      %40 = arith.subf %32, %39 : vector<8x64xf32>
      %41 = arith.mulf %40, %40 : vector<8x64xf32>
      %cst_28 = arith.constant dense<0.000000e+00> : vector<8xf32>
      %42 = vector.multi_reduction <add>, %41, %cst_28 [1] : vector<8x64xf32> to vector<8xf32>
      %43 = vector.shape_cast %42 : vector<8xf32> to vector<8x1xf32>
      %cst_29 = arith.constant 6.400000e+01 : f32
      %44 = vector.broadcast %cst_29 : f32 to vector<8x1xf32>
      %45 = arith.divf %43, %44 : vector<8x1xf32>
      %46 = vector.broadcast %38 : vector<8x1xf32> to vector<8x64xf32>
      %47 = arith.subf %32, %46 : vector<8x64xf32>
      %cst_30 = arith.constant 9.99999974E-6 : f32
      %48 = vector.broadcast %cst_30 : f32 to vector<8x1xf32>
      %49 = arith.addf %45, %48 : vector<8x1xf32>
      %50 = math.rsqrt %49 : vector<8x1xf32>
      %51 = vector.broadcast %50 : vector<8x1xf32> to vector<8x64xf32>
      %52 = arith.mulf %47, %51 : vector<8x64xf32>
      %53 = vector.broadcast %33 : vector<1x64xf32> to vector<8x64xf32>
      %54 = arith.mulf %52, %53 : vector<8x64xf32>
      %55 = vector.broadcast %34 : vector<1x64xf32> to vector<8x64xf32>
      %56 = arith.addf %54, %55 : vector<8x64xf32>
      %57 = arith.truncf %56 : vector<8x64xf32> to vector<8x64xbf16>
      %c0_31 = arith.constant 0 : index
      %c0_32 = arith.constant 0 : index
      %58 = vector.load %arg11[%c0_31, %c0_32] : memref<8x64xbf16, #tpu.memory_space<vmem>>, vector<8x64xbf16>
      tpu.vector_store %arg11[%c0_31, %c0_32], %57 {strides = array<i32>} : memref<8x64xbf16, #tpu.memory_space<vmem>>, vector<8x64xbf16>,
      %cst_33 = arith.constant 0.000000e+00 : f32
      %59 = vector.broadcast %cst_33 : f32 to vector<8x64xf32>
      %c0_34 = arith.constant 0 : index
      %c0_35 = arith.constant 0 : index
      %60 = vector.load %arg12[%c0_34, %c0_35] : memref<8x64xf32, #tpu.memory_space<vmem>>, vector<8x64xf32>
      tpu.vector_store %arg12[%c0_34, %c0_35], %59 {strides = array<i32>} : memref<8x64xf32, #tpu.memory_space<vmem>>, vector<8x64xf32>,
    } else {
    }
    %c0 = arith.constant 0 : index
    %c0_1 = arith.constant 0 : index
    %3 = vector.load %arg11[%c0, %c0_1] : memref<8x64xbf16, #tpu.memory_space<vmem>>, vector<8x64xbf16>
    %c0_2 = arith.constant 0 : index
    %c0_3 = arith.constant 0 : index
    %4 = vector.load %arg6[%c0_2, %c0_3] : memref<64x256xbf16, #tpu.memory_space<vmem>>, vector<64x256xbf16>
    %cst = arith.constant dense<0.000000e+00> : vector<8x256xf32>
    %5 = tpu.matmul %3, %4, %cst {dimension_numbers = #tpu.dot_dimension_numbers<[1], [0], [0], [1], [0, 0, 1, 1], [], []>} : vector<8x64xbf16>, vector<64x256xbf16>, vector<8x256xf32> -> vector<8x256xf32>
    %c0_4 = arith.constant 0 : index
    %c0_5 = arith.constant 0 : index
    %6 = vector.load %arg7[%c0_4, %c0_5] : memref<1x256xf32, #tpu.memory_space<vmem>>, vector<1x256xf32>
    %7 = vector.broadcast %6 : vector<1x256xf32> to vector<8x256xf32>
    %8 = arith.addf %5, %7 : vector<8x256xf32>
    %cst_6 = arith.constant 5.000000e-01 : f32
    %9 = vector.broadcast %cst_6 : f32 to vector<8x256xf32>
    %10 = arith.mulf %9, %8 : vector<8x256xf32>
    %11 = arith.mulf %8, %8 : vector<8x256xf32>
    %12 = arith.mulf %8, %11 : vector<8x256xf32>
    %cst_7 = arith.constant 4.471500e-02 : f32
    %13 = vector.broadcast %cst_7 : f32 to vector<8x256xf32>
    %14 = arith.mulf %13, %12 : vector<8x256xf32>
    %15 = arith.addf %8, %14 : vector<8x256xf32>
    %cst_8 = arith.constant 0.797884583 : f32
    %16 = vector.broadcast %cst_8 : f32 to vector<8x256xf32>
    %17 = arith.mulf %16, %15 : vector<8x256xf32>
    %18 = math.tanh %17 : vector<8x256xf32>
    %cst_9 = arith.constant 1.000000e+00 : f32
    %19 = vector.broadcast %cst_9 : f32 to vector<8x256xf32>
    %20 = arith.addf %19, %18 : vector<8x256xf32>
    %21 = arith.mulf %10, %20 : vector<8x256xf32>
    %22 = arith.truncf %21 : vector<8x256xf32> to vector<8x256xbf16>
    %c0_10 = arith.constant 0 : index
    %c0_11 = arith.constant 0 : index
    %23 = vector.load %arg12[%c0_10, %c0_11] : memref<8x64xf32, #tpu.memory_space<vmem>>, vector<8x64xf32>
    %c0_12 = arith.constant 0 : index
    %c0_13 = arith.constant 0 : index
    %24 = vector.load %arg8[%c0_12, %c0_13] : memref<256x64xbf16, #tpu.memory_space<vmem>>, vector<256x64xbf16>
    %cst_14 = arith.constant dense<0.000000e+00> : vector<8x64xf32>
    %25 = tpu.matmul %22, %24, %cst_14 {dimension_numbers = #tpu.dot_dimension_numbers<[1], [0], [0], [1], [0, 0, 1, 1], [], []>} : vector<8x256xbf16>, vector<256x64xbf16>, vector<8x64xf32> -> vector<8x64xf32>
    %26 = arith.addf %23, %25 : vector<8x64xf32>
    %c0_15 = arith.constant 0 : index
    %c0_16 = arith.constant 0 : index
    %27 = vector.load %arg12[%c0_15, %c0_16] : memref<8x64xf32, #tpu.memory_space<vmem>>, vector<8x64xf32>
    tpu.vector_store %arg12[%c0_15, %c0_16], %26 {strides = array<i32>} : memref<8x64xf32, #tpu.memory_space<vmem>>, vector<8x64xf32>,
    %c0_i32_17 = arith.constant 0 : i32
    %28 = arith.cmpi eq, %arg2, %c0_i32_17 : i32
    %29 = arith.extui %28 : i1 to i32
    %c0_i32_18 = arith.constant 0 : i32
    %30 = arith.cmpi ne, %29, %c0_i32_18 : i32
    scf.if %30 {
      %c0_19 = arith.constant 0 : index
      %c0_20 = arith.constant 0 : index
      %c0_21 = arith.constant 0 : index
      %31 = vector.load %arg3[%c0_19, %c0_20, %c0_21] : memref<1x8x64xf32, #tpu.memory_space<vmem>>, vector<1x8x64xf32>
      %32 = vector.shape_cast %31 : vector<1x8x64xf32> to vector<8x64xf32>
      %c0_22 = arith.constant 0 : index
      %c0_23 = arith.constant 0 : index
      %33 = vector.load %arg12[%c0_22, %c0_23] : memref<8x64xf32, #tpu.memory_space<vmem>>, vector<8x64xf32>
      %34 = arith.addf %32, %33 : vector<8x64xf32>
      %c0_24 = arith.constant 0 : index
      %c0_25 = arith.constant 0 : index
      %35 = vector.load %arg9[%c0_24, %c0_25] : memref<1x64xf32, #tpu.memory_space<vmem>>, vector<1x64xf32>
      %36 = vector.broadcast %35 : vector<1x64xf32> to vector<8x64xf32>
      %37 = arith.addf %34, %36 : vector<8x64xf32>
      %c0_26 = arith.constant 0 : index
      %c0_27 = arith.constant 0 : index
      %c0_28 = arith.constant 0 : index
      %38 = vector.load %arg10[%c0_26, %c0_27, %c0_28] : memref<1x8x64xf32, #tpu.memory_space<vmem>>, vector<1x8x64xf32>
      %39 = vector.shape_cast %38 : vector<1x8x64xf32> to vector<8x64xf32>
      %40 = vector.shape_cast %37 : vector<8x64xf32> to vector<1x8x64xf32>
      tpu.vector_store %arg10[%c0_26, %c0_27, %c0_28], %40 {strides = array<i32>} : memref<1x8x64xf32, #tpu.memory_space<vmem>>, vector<1x8x64xf32>,
    } else {
    }
    return
  }
  func.func @transform_0(%arg0: i32, %arg1: i32, %arg2: i32) -> (i32, i32, i32) {
    %c0_i32 = arith.constant 0 : i32
    %c0_i32_0 = arith.constant 0 : i32
    return %arg0, %arg1, %c0_i32 : i32, i32, i32
  }
  func.func @transform_1(%arg0: i32, %arg1: i32, %arg2: i32) -> (i32, i32) {
    %c0_i32 = arith.constant 0 : i32
    %c0_i32_0 = arith.constant 0 : i32
    %c0_i32_1 = arith.constant 0 : i32
    return %c0_i32, %c0_i32_0 : i32, i32
  }
  func.func @transform_2(%arg0: i32, %arg1: i32, %arg2: i32) -> (i32, i32) {
    %c0_i32 = arith.constant 0 : i32
    %c0_i32_0 = arith.constant 0 : i32
    %c0_i32_1 = arith.constant 0 : i32
    return %c0_i32, %c0_i32_0 : i32, i32
  }
  func.func @transform_3(%arg0: i32, %arg1: i32, %arg2: i32) -> (i32, i32) {
    %c0_i32 = arith.constant 0 : i32
    %c0_i32_0 = arith.constant 0 : i32
    return %c0_i32, %arg2 : i32, i32
  }
  func.func @transform_4(%arg0: i32, %arg1: i32, %arg2: i32) -> (i32, i32) {
    %c0_i32 = arith.constant 0 : i32
    %c0_i32_0 = arith.constant 0 : i32
    return %c0_i32, %arg2 : i32, i32
  }
  func.func @transform_5(%arg0: i32, %arg1: i32, %arg2: i32) -> (i32, i32) {
    %c0_i32 = arith.constant 0 : i32
    %c0_i32_0 = arith.constant 0 : i32
    return %arg2, %c0_i32 : i32, i32
  }
  func.func @transform_6(%arg0: i32, %arg1: i32, %arg2: i32) -> (i32, i32) {
    %c0_i32 = arith.constant 0 : i32
    %c0_i32_0 = arith.constant 0 : i32
    %c0_i32_1 = arith.constant 0 : i32
    return %c0_i32, %c0_i32_0 : i32, i32
  }
  func.func @transform_7(%arg0: i32, %arg1: i32, %arg2: i32) -> (i32, i32, i32) {
    %c0_i32 = arith.constant 0 : i32
    %c0_i32_0 = arith.constant 0 : i32
    return %arg0, %arg1, %c0_i32 : i32, i32, i32
  }
}

module attributes {stable_mosaic.version = 11 : i64} {
  func.func @lm_head_kernel(%arg0: i32, %arg1: i32, %arg2: memref<16x64xf32, #tpu.memory_space<vmem>>, %arg3: memref<1x64xf32, #tpu.memory_space<vmem>>, %arg4: memref<1x64xf32, #tpu.memory_space<vmem>>, %arg5: memref<64x128xbf16, #tpu.memory_space<vmem>>, %arg6: memref<16x128xf32, #tpu.memory_space<vmem>>, %arg7: memref<16x64xbf16, #tpu.memory_space<vmem>>) attributes {dimension_semantics = [#tpu.dimension_semantics<parallel>, #tpu.dimension_semantics<arbitrary>], iteration_bounds = array<i64: 1, 1>, scalar_prefetch = 0 : i64, scratch_operands = 1 : i64, tpu.core_type = #tpu.core_type<tc>, window_params = [{transform_indices = @transform_0, window_bounds = array<i64: 16, 64>}, {pipeline_mode = #tpu.pipeline_mode<synchronous>, transform_indices = @transform_1, window_bounds = array<i64: 1, 64>}, {pipeline_mode = #tpu.pipeline_mode<synchronous>, transform_indices = @transform_2, window_bounds = array<i64: 1, 64>}, {transform_indices = @transform_3, window_bounds = array<i64: 64, 128>}, {transform_indices = @transform_4, window_bounds = array<i64: 16, 128>}]} {
    %c0_i32 = arith.constant 0 : i32
    %0 = arith.cmpi eq, %arg1, %c0_i32 : i32
    %1 = arith.extui %0 : i1 to i32
    %c0_i32_0 = arith.constant 0 : i32
    %2 = arith.cmpi ne, %1, %c0_i32_0 : i32
    scf.if %2 {
      %c0_6 = arith.constant 0 : index
      %c0_7 = arith.constant 0 : index
      %7 = vector.load %arg2[%c0_6, %c0_7] : memref<16x64xf32, #tpu.memory_space<vmem>>, vector<16x64xf32>
      %c0_8 = arith.constant 0 : index
      %c0_9 = arith.constant 0 : index
      %8 = vector.load %arg3[%c0_8, %c0_9] : memref<1x64xf32, #tpu.memory_space<vmem>>, vector<1x64xf32>
      %c0_10 = arith.constant 0 : index
      %c0_11 = arith.constant 0 : index
      %9 = vector.load %arg4[%c0_10, %c0_11] : memref<1x64xf32, #tpu.memory_space<vmem>>, vector<1x64xf32>
      %cst_12 = arith.constant dense<0.000000e+00> : vector<16xf32>
      %10 = vector.multi_reduction <add>, %7, %cst_12 [1] : vector<16x64xf32> to vector<16xf32>
      %11 = vector.shape_cast %10 : vector<16xf32> to vector<16x1xf32>
      %cst_13 = arith.constant 6.400000e+01 : f32
      %12 = vector.broadcast %cst_13 : f32 to vector<16x1xf32>
      %13 = arith.divf %11, %12 : vector<16x1xf32>
      %14 = vector.broadcast %13 : vector<16x1xf32> to vector<16x64xf32>
      %15 = arith.subf %7, %14 : vector<16x64xf32>
      %16 = arith.mulf %15, %15 : vector<16x64xf32>
      %cst_14 = arith.constant dense<0.000000e+00> : vector<16xf32>
      %17 = vector.multi_reduction <add>, %16, %cst_14 [1] : vector<16x64xf32> to vector<16xf32>
      %18 = vector.shape_cast %17 : vector<16xf32> to vector<16x1xf32>
      %cst_15 = arith.constant 6.400000e+01 : f32
      %19 = vector.broadcast %cst_15 : f32 to vector<16x1xf32>
      %20 = arith.divf %18, %19 : vector<16x1xf32>
      %21 = vector.broadcast %13 : vector<16x1xf32> to vector<16x64xf32>
      %22 = arith.subf %7, %21 : vector<16x64xf32>
      %cst_16 = arith.constant 9.99999974E-6 : f32
      %23 = vector.broadcast %cst_16 : f32 to vector<16x1xf32>
      %24 = arith.addf %20, %23 : vector<16x1xf32>
      %25 = math.rsqrt %24 : vector<16x1xf32>
      %26 = vector.broadcast %25 : vector<16x1xf32> to vector<16x64xf32>
      %27 = arith.mulf %22, %26 : vector<16x64xf32>
      %28 = vector.broadcast %8 : vector<1x64xf32> to vector<16x64xf32>
      %29 = arith.mulf %27, %28 : vector<16x64xf32>
      %30 = vector.broadcast %9 : vector<1x64xf32> to vector<16x64xf32>
      %31 = arith.addf %29, %30 : vector<16x64xf32>
      %32 = arith.truncf %31 : vector<16x64xf32> to vector<16x64xbf16>
      %c0_17 = arith.constant 0 : index
      %c0_18 = arith.constant 0 : index
      %33 = vector.load %arg7[%c0_17, %c0_18] : memref<16x64xbf16, #tpu.memory_space<vmem>>, vector<16x64xbf16>
      tpu.vector_store %arg7[%c0_17, %c0_18], %32 {strides = array<i32>} : memref<16x64xbf16, #tpu.memory_space<vmem>>, vector<16x64xbf16>,
    } else {
    }
    %c0 = arith.constant 0 : index
    %c0_1 = arith.constant 0 : index
    %3 = vector.load %arg7[%c0, %c0_1] : memref<16x64xbf16, #tpu.memory_space<vmem>>, vector<16x64xbf16>
    %c0_2 = arith.constant 0 : index
    %c0_3 = arith.constant 0 : index
    %4 = vector.load %arg5[%c0_2, %c0_3] : memref<64x128xbf16, #tpu.memory_space<vmem>>, vector<64x128xbf16>
    %cst = arith.constant dense<0.000000e+00> : vector<16x128xf32>
    %5 = tpu.matmul %3, %4, %cst {dimension_numbers = #tpu.dot_dimension_numbers<[1], [0], [0], [1], [0, 0, 1, 1], [], []>} : vector<16x64xbf16>, vector<64x128xbf16>, vector<16x128xf32> -> vector<16x128xf32>
    %c0_4 = arith.constant 0 : index
    %c0_5 = arith.constant 0 : index
    %6 = vector.load %arg6[%c0_4, %c0_5] : memref<16x128xf32, #tpu.memory_space<vmem>>, vector<16x128xf32>
    tpu.vector_store %arg6[%c0_4, %c0_5], %5 {strides = array<i32>} : memref<16x128xf32, #tpu.memory_space<vmem>>, vector<16x128xf32>,
    return
  }
  func.func @transform_0(%arg0: i32, %arg1: i32) -> (i32, i32) {
    %c0_i32 = arith.constant 0 : i32
    %c0_i32_0 = arith.constant 0 : i32
    return %arg0, %c0_i32 : i32, i32
  }
  func.func @transform_1(%arg0: i32, %arg1: i32) -> (i32, i32) {
    %c0_i32 = arith.constant 0 : i32
    %c0_i32_0 = arith.constant 0 : i32
    %c0_i32_1 = arith.constant 0 : i32
    return %c0_i32, %c0_i32_0 : i32, i32
  }
  func.func @transform_2(%arg0: i32, %arg1: i32) -> (i32, i32) {
    %c0_i32 = arith.constant 0 : i32
    %c0_i32_0 = arith.constant 0 : i32
    %c0_i32_1 = arith.constant 0 : i32
    return %c0_i32, %c0_i32_0 : i32, i32
  }
  func.func @transform_3(%arg0: i32, %arg1: i32) -> (i32, i32) {
    %c0_i32 = arith.constant 0 : i32
    %c0_i32_0 = arith.constant 0 : i32
    return %c0_i32, %arg1 : i32, i32
  }
  func.func @transform_4(%arg0: i32, %arg1: i32) -> (i32, i32) {
    %c0_i32 = arith.constant 0 : i32
    return %arg0, %arg1 : i32, i32
  }
}

</mosaic_0001>

<bundles_post_ra>
// kernel: gpt_forward.13
= control target key start
LH: loop header
LB: loop body
LE: loop exit
PB: predicated region body
PF: predicated region fallthrough
CT: control target
= control target key end

     0   :  { %vm27_vm0 = vcmask 523264   ;;  %s302_s0 = inlined_call_operand.vmem [shape: f32[16,64], index: 0, kind: input, shape index: {}]   ;;  %s303_s1 = inlined_call_operand.vmem [shape: f32[1,64], index: 1, kind: input, shape index: {}]   ;;  %s304_s2 = inlined_call_operand.vmem [shape: f32[1,64], index: 2, kind: input, shape index: {}]   ;;  %s305_s3 = inlined_call_operand.vmem [shape: bf16[64,128], index: 3, kind: input, shape index: {}]   ;;  %s306_s4 = inlined_call_operand.hbm [shape: f32[16,128], index: 4, kind: output, shape index: {}]  }
   0x1   :  { %v23_v0 = vld [vmem:[%s302_s0] sm:$0xff]  ;;  %v24_v1 = vld [vmem:[%s302_s0 + $0x8] sm:$0xff] }
   0x2   :  { %v28_v2 = vsel %vm27_vm0, %v23_v0, 0.0  ;;  %v31_v3 = vsel %vm27_vm0, %v24_v1, 0.0 }
   0x3   :  { %29 = vadd.xlane.f32.xlu0 %v28_v2 }
   0x4   :  { %9 = vsyncpa [#allocation4], 0  ;;  %v198_v14 = vld [vmem:[%s305_s3] sm:$0xff]   ;;  %v230_v15 = vmov 0.0   ;;  %v199_v16 = vld [vmem:[%s305_s3 + $0x8] sm:$0xff]   ;;  %vm231_vm1 = vmmov 0  }
   0x5   :  { %181 = vmatprep.subr.bf16.mxu0 %v230_v15  ;;  %v200_v17 = vld [vmem:[%s305_s3 + $0x10] sm:$0xff]   ;;  %v201_v18 = vld [vmem:[%s305_s3 + $0x18] sm:$0xff]   ;;  %189 = vmatprep.mubr.msk.bf16.mxu0 %vm231_vm1, %v230_v15  ;;  %v169_v27 = vld [vmem:[%s303_s1] ss:$0 sm:$0xff]  ;;  %s232_s29 = smov [#allocation3]  }
   0x6   :  { %182 = vmatpush3.bf16.msra.mxu0 %v198_v14  ;;  %v170_v31 = vld [vmem:[%s304_s2] ss:$0 sm:$0xff]  ;;  %s158_s30 = sshll.u32 %s232_s29, 4  ;;  %s159_s30 = int_to_ptr.vmem [resolvable:$true] %s158_s30 }
   0x7   :  { %32 = vadd.xlane.f32.xlu0 %v31_v3  ;;  %183 = vmatprep.subr.bf16.mxu0 %v230_v15  ;;  %s206_s1 = scalar_lea.vmem %s159_s30, 256  ;;  %p211_p1 = scmp.lt.s32.totalorder %s159_s30, %s159_s30 }
   0x8   :  { %p207_p0 = scmp.ne.s32.totalorder %s159_s30, %s206_s1  ;;  %p212_p2 = scmp.lt.s32.totalorder %s206_s1, %s206_s1 }
   0xa   :  { %184 = vmatpush3.bf16.msra.mxu0 %v199_v16  ;;  %p213_p3 = por %p212_p2, %p211_p1 }
   0xb   :  { %185 = vmatprep.subr.bf16.mxu0 %v230_v15 }
   0xc   :  { %p214_p4 = pnand %p213_p3, %p207_p0 }
   0xe   :  { %186 = vmatpush3.bf16.msra.mxu0 %v200_v17 }
   0xf   :  { %187 = vmatprep.subr.bf16.mxu0 %v230_v15 }
  0x12   :  { %188 = vmatpush3.bf16.msra.mxu0 %v201_v18 }
  0x90   :  { %v30_v4 = vpop.xlane.xlu0 %29 }
  0x91   :  { %v35_v5 = vmul.f32 0.015625, %v30_v4 }
  0x93   :  { %v37_v6 = vsub.f32 %v23_v0, %v35_v5 }
  0x94   :  { %v33_v7 = vpop.xlane.xlu0 %32 }
  0x95   :  { %v36_v8 = vmul.f32 0.015625, %v33_v7  ;;  %v39_v9 = vmul.f32 %v37_v6, %v37_v6 }
  0x97   :  { %v38_v10 = vsub.f32 %v24_v1, %v36_v8  ;;  %v41_v11 = vsel %vm27_vm0, %v39_v9, 0.0 }
  0x98   :  { %42 = vadd.xlane.f32.xlu1 %v41_v11 }
  0x99   :  { %v40_v12 = vmul.f32 %v38_v10, %v38_v10 }
  0x9b   :  { %v44_v13 = vsel %vm27_vm0, %v40_v12, 0.0 }
  0x9c   :  { %45 = vadd.xlane.f32.xlu1 %v44_v13 }
 0x125   :  { %v43_v19 = vpop.xlane.xlu1 %42 }
 0x126   :  { %v47_v20 = vmul.f32 0.015625, %v43_v19 }
 0x128   :  { %v49_v21 = vadd.f32 1e-05, %v47_v20 }
 0x129   :  { %v46_v22 = vpop.xlane.xlu1 %45 }
 0x12a   :  { %202 = vrsqrt.f32 %v49_v21  ;;  %v48_v23 = vmul.f32 0.015625, %v46_v22 }
 0x12c   :  { %v50_v24 = vadd.f32 1e-05, %v48_v23 }
 0x12e   :  { %204 = vrsqrt.f32 %v50_v24 }
 0x134   :  { %v203_v25 = vpop.eup %202 }
 0x135   :  { %v53_v26 = vmul.f32 %v203_v25, %v37_v6 }
 0x137   :  { %v61_v29 = vmul.f32 %v169_v27, %v53_v26 }
 0x138   :  { %v205_v28 = vpop.eup %204 }
 0x139   :  { %v54_v30 = vmul.f32 %v205_v28, %v38_v10  ;;  %v69_v33 = vadd.f32 %v170_v31, %v61_v29 }
 0x13b   :  { %v62_v32 = vmul.f32 %v169_v27, %v54_v30 }
 0x13d   :  { %v70_v34 = vadd.f32 %v170_v31, %v62_v32 }
 0x13f   :  { %v71_v35 = vpack.c.bf16 %v70_v34, %v69_v33 }
 0x141   :  { %72 = vst.msk [vmem:[#allocation2] sm:$0xff] %vm27_vm0, %v71_v35 }
 0x148   :  { %v73_v36 = vld [vmem:[#allocation2] sm:$0xff] }
 0x149   :  { %190 = vmatmul.mubr.msk.bf16.vlgmr.msra.gmra.mrb[0].mxu0 %vm27_vm0, %v73_v36 }
 0x21c   :  { %v144_v37 = vpop.f32.mrb[0].mxu0 }
 0x21d   :  { %151 = vst [vmem:[#allocation3] sm:$0xff] %v144_v37  ;;  %v191_v38 = vpop.f32.mrb[1].mxu0 }
 0x21e   :  { %v147_v39 = vpop.f32.mrb[2].mxu0 }
 0x21f   :  { %152 = vst [vmem:[#allocation3 + $0x8] sm:$0xff] %v147_v39  ;;  %v192_v40 = vpop.f32.mrb[3].mxu0 }
 0x220   :  { %217 = shalt.err (!%p214_p4)
}
 0x221   :  { %s218_s6 = scalar_lea.hbm %s306_s4, 256 }
 0x222   :  { %p219_p5 = scmp.ne.s32.totalorder %s306_s4, %s218_s6  ;;  %p222_p6 = scmp.lt.u32.totalorder %s218_s6, %s306_s4 }
 0x224   :  { %p224_p7 = pnand %p222_p6, %p219_p5 }
 0x226   :  { %227 = shalt.err (!%p224_p7)
}
 0x227   :  { %s233_s11 = smov 128   ;;  %s234_s12 = smov 8  }
 0x228   :  { %164 = dma.vmem_to_hbm [thread:$0]  %s159_s30, 256, %s306_s4, [#allocation4], %s233_s11, %s233_s11, %s234_s12  }
 0x229   :  { %228 = dma.done.wait [#allocation4], 256  }
 0x22a   :  { %229 = vsyncadd [#allocation4], 4294967040 }
 0x22b   :  { %168 = vsyncpa [#allocation4], 1 }

// kernel: gpt_forward.9
= control target key start
LH: loop header
LB: loop body
LE: loop exit
PB: predicated region body
PF: predicated region fallthrough
CT: control target
= control target key end

     0   :  { %s1036_s24 = smov 0   ;;  %s1038_s25 = smov 0   ;;  %s1171_s0 = inlined_call_operand.vmem [shape: f32[2,8,64], index: 0, kind: input, shape index: {}]   ;;  %s1172_s1 = inlined_call_operand.vmem [shape: f32[1,64], index: 1, kind: input, shape index: {}]   ;;  %s1173_s2 = inlined_call_operand.vmem [shape: f32[1,64], index: 2, kind: input, shape index: {}]   ;;  %s1174_s3 = inlined_call_operand.vmem [shape: bf16[64,256], index: 3, kind: input, shape index: {}]   ;;  %s1175_s4 = inlined_call_operand.vmem [shape: f32[1,256], index: 4, kind: input, shape index: {}]   ;;  %s1176_s5 = inlined_call_operand.vmem [shape: bf16[256,64], index: 5, kind: input, shape index: {}]   ;;  %s1177_s6 = inlined_call_operand.vmem [shape: f32[1,64], index: 6, kind: input, shape index: {}]   ;;  %s1178_s7 = inlined_call_operand.vmem [shape: f32[2,8,64], index: 7, kind: output, shape index: {}]  }
   0x1   :  { %s1040_s26 = smov 0  }
   0x2 LB: > { %s36_s27 = sadd.s32 1, %s988_s25  ;;  %p855_p0 = scmp.ge.s32.totalorder %s992_s26, 1  ;;  %s992_s26 = sphi %s1040_s26, %s17_s26   ;;  %s988_s25 = sphi %s1038_s25, %s1180_s25   ;;  %s984_s24 = sphi %s1036_s24, %s1179_s24  }
   0x3   : > { %p38_p1 = scmp.ge.s32.totalorder %s36_s27, 2  ;;  %p294_p2 = scmp.lt.s32.totalorder %s992_s26, 3 }
   0x5   : > { %s1182_s27 = smov (%p38_p1, %s36_s27), 0  ;;  %p295_p3 = pnand %p855_p0, %p294_p2 }
   0x6   : > { %p344_p4 = scmp.lt.s32.totalorder (!%p295_p3), %s984_s24, 1  ;;  %vm383_vm0 = vcmask (!%p295_p3), 523264   ;;  %v936_v7 = vld [vmem:[%s1174_s3 + $0x4] ss:$8 sps:$4 sm:$0xff] (!%p295_p3)   ;;  %v938_v8 = vld [vmem:[%s1174_s3] ss:$8 sps:$4 sm:$0xff] (!%p295_p3)   ;;  %v427_v43 = vlaneseq (!%p295_p3) }
   0x7   : > { %298 = sbr.rel (%p295_p3) target bundleno = 814 (0x32e), region = 48  ;;  %481 = vmatprep.subr.bf16.mxu0 (!%p295_p3), %v936_v7  ;;  %v939_v9 = vld [vmem:[%s1174_s3 + $0x14] ss:$8 sps:$4 sm:$0xff] (!%p295_p3)   ;;  %v941_v10 = vld [vmem:[%s1174_s3 + $0x10] ss:$8 sps:$4 sm:$0xff] (!%p295_p3)   ;;  %v994_v15 = vmov (!%p295_p3), 0  }
   0x8   : > { %482 = vmatpush1.bf16.msra.mxu0 (!%p295_p3), %v938_v8  ;;  %v942_v11 = vld [vmem:[%s1174_s3 + $0x24] ss:$8 sps:$4 sm:$0xff] (!%p295_p3)   ;;  %v944_v12 = vld [vmem:[%s1174_s3 + $0x20] ss:$8 sps:$4 sm:$0xff] (!%p295_p3)   ;;  %v945_v13 = vld [vmem:[%s1174_s3 + $0x34] ss:$8 sps:$4 sm:$0xff] (!%p295_p3)   ;;  %513 = vmatprep.mubr.bf16.mxu0 (!%p295_p3), %v994_v15 }
   0x9   : > { %483 = vmatprep.subr.bf16.mxu0 (!%p295_p3), %v939_v9  ;;  %v947_v14 = vld [vmem:[%s1174_s3 + $0x30] ss:$8 sps:$4 sm:$0xff] (!%p295_p3)   ;;  %v858_v20 = vld [vmem:[%s1172_s1] ss:$0 sm:$0xff] (!%p295_p3)  ;;  %vm413_vm1 = vcmask (!%p295_p3), 519168   ;;  %v950_v29 = vld [vmem:[%s1176_s5 + $0x48] sm:$0xff] (!%p295_p3)  }
   0xa   : > { %v859_v22 = vld [vmem:[%s1173_s2] ss:$0 sm:$0xff] (!%p295_p3)  ;;  %v951_v30 = vld [vmem:[%s1176_s5 + $0x8] sm:$0xff] (!%p295_p3)   ;;  %v952_v31 = vld [vmem:[%s1176_s5 + $0x50] sm:$0xff] (!%p295_p3)   ;;  %v428_v44 = vshrl.u32 (!%p295_p3), %v427_v43, 7 }
   0xb   : > { %v948_v27 = vld [vmem:[%s1176_s5 + $0x40] sm:$0xff] (!%p295_p3)   ;;  %v953_v32 = vld [vmem:[%s1176_s5 + $0x10] sm:$0xff] (!%p295_p3)   ;;  %v954_v33 = vld [vmem:[%s1176_s5 + $0x58] sm:$0xff] (!%p295_p3)  }
   0xc   : > { %484 = vmatpush1.bf16.msra.mxu0 (!%p295_p3), %v941_v10  ;;  %v949_v28 = vld [vmem:[%s1176_s5] sm:$0xff] (!%p295_p3)   ;;  %888 = vmatprep.subr.bf16.mxu1 (!%p295_p3), %v948_v27  ;;  %v955_v34 = vld [vmem:[%s1176_s5 + $0x18] sm:$0xff] (!%p295_p3)   ;;  %v958_v37 = vld [vmem:[%s1176_s5 + $0x68] sm:$0xff] (!%p295_p3)   ;;  %v429_v45 = vsub.s32 (!%p295_p3), 0, %v428_v44  ;;  %v433_v47 = vsub.s32 (!%p295_p3), 1, %v428_v44 }
   0xd   : > { %485 = vmatprep.subr.bf16.mxu0 (!%p295_p3), %v942_v11  ;;  %889 = vmatpush3.bf16.msra.mxu1 (!%p295_p3), %v949_v28  ;;  %v956_v35 = vld [vmem:[%s1176_s5 + $0x60] sm:$0xff] (!%p295_p3)   ;;  %v959_v38 = vld [vmem:[%s1176_s5 + $0x28] sm:$0xff] (!%p295_p3)   ;;  %v960_v39 = vld [vmem:[%s1176_s5 + $0x70] sm:$0xff] (!%p295_p3)  }
   0xe   : > { %s1184_s24 = smov (!%p344_p4, %s984_s24), 1  ;;  %890 = vmatprep.subr.bf16.mxu1 %v950_v29  ;;  %v957_v36 = vld [vmem:[%s1176_s5 + $0x20] sm:$0xff]   ;;  %v961_v40 = vld [vmem:[%s1176_s5 + $0x30] sm:$0xff]   ;;  %v962_v41 = vld [vmem:[%s1176_s5 + $0x78] sm:$0xff]  }
   0xf   : > { %s856_s28 = sshll.u32 %s1184_s24, 3  ;;  %v963_v42 = vld [vmem:[%s1176_s5 + $0x38] sm:$0xff]   ;;  %v425_v46 = vld [vmem:[%s1175_s4] sm:$0x3] }
  0x10   : > { %s350_s8 = scalar_lea.vmem %s1171_s0, %s856_s28  ;;  %486 = vmatpush1.bf16.msra.mxu0 %v944_v12  ;;  %v430_v48 = vrot.slane %v425_v46, %v429_v45  ;;  %v434_v49 = vrot.slane %v425_v46, %v433_v47  ;;  %s374_s13 = scalar_lea.vmem %s1178_s7, %s856_s28 }
  0x11   : > { %v1062_v0 = vld [vmem:[%s350_s8] sm:$0xff]  ;;  %487 = vmatprep.subr.bf16.mxu0 %v945_v13  ;;  %891 = vmatpush3.bf16.msra.mxu1 %v951_v30  ;;  %v995_v13 = vmov 0.0  }
  0x12   : > { %v384_v1 = vsel %vm383_vm0, %v1062_v0, 0.0  ;;  %892 = vmatprep.subr.bf16.mxu1 %v952_v31  ;;  %415 = vst.msk [vmem:[#allocation3] sm:$0xff] %vm383_vm0, %v995_v13 }
  0x13   : > { %385 = vadd.xlane.f32.xlu0 %v384_v1 }
  0x14   : > { %488 = vmatpush1.bf16.msra.mxu0 %v947_v14 }
  0x15   : > { %893 = vmatpush3.bf16.msra.mxu1 %v953_v32 }
  0x16   : > { %894 = vmatprep.subr.bf16.mxu1 %v954_v33 }
  0x19   : > { %895 = vmatpush3.bf16.msra.mxu1 %v955_v34  ;;  %v542_v15 = vld [vmem:[#allocation3] sm:$0xff] }
  0x1a   : > { %896 = vmatprep.subr.bf16.mxu1 %v956_v35 }
  0x1d   : > { %897 = vmatpush3.bf16.msra.mxu1 %v957_v36 }
  0x1e   : > { %898 = vmatprep.subr.bf16.mxu1 %v958_v37 }
  0x21   : > { %899 = vmatpush3.bf16.msra.mxu1 %v959_v38 }
  0x22   : > { %900 = vmatprep.subr.bf16.mxu1 %v960_v39 }
  0x25   : > { %901 = vmatpush3.bf16.msra.mxu1 %v961_v40 }
  0x26   : > { %902 = vmatprep.subr.bf16.mxu1 %v962_v41 }
  0x29   : > { %903 = vmatpush3.bf16.msra.mxu1 %v963_v42 }
  0xa0   : > { %v386_v2 = vpop.xlane.xlu0 %385 }
  0xa1   : > { %v388_v3 = vmul.f32 0.015625, %v386_v2 }
  0xa3   : > { %v389_v4 = vsub.f32 %v1062_v0, %v388_v3 }
  0xa5   : > { %v390_v5 = vmul.f32 %v389_v4, %v389_v4 }
  0xa7   : > { %v391_v6 = vsel %vm383_vm0, %v390_v5, 0.0 }
  0xa8   : > { %392 = vadd.xlane.f32.xlu0 %v391_v6 }
 0x135   : > { %v393_v16 = vpop.xlane.xlu0 %392 }
 0x136   : > { %v394_v17 = vmul.f32 0.015625, %v393_v16 }
 0x138   : > { %v395_v18 = vadd.f32 1e-05, %v394_v17 }
 0x13a   : > { %964 = vrsqrt.f32 %v395_v18 }
 0x144   : > { %v965_v19 = vpop.eup %964 }
 0x145   : > { %v397_v21 = vmul.f32 %v965_v19, %v389_v4 }
 0x147   : > { %v404_v23 = vmul.f32 %v858_v20, %v397_v21 }
 0x149   : > { %v411_v24 = vadd.f32 %v859_v22, %v404_v23  ;;  %v885_v22 = vld [vmem:[%s1177_s6] ss:$0 sm:$0xff] }
 0x14b   : > { %v412_v25 = vpack.c.bf16 %v411_v24, %v411_v24 }
 0x14d   : > { %414 = vst.msk [vmem:[#allocation2] sm:$0xf] %vm413_vm1, %v412_v25 }
 0x154   : > { %v416_v26 = vld [vmem:[#allocation2] sm:$0xf] }
 0x155   : > { %868 = vmatmul.mubr.msk.bf16.vlgmr.msra.gmra.mrb[0].mxu0 %vm383_vm0, %v416_v26 }
 0x228   : > { %v515_v50 = vpop.f32.mrb[0].mxu0 }
 0x229   : > { %v516_v51 = vadd.f32 %v515_v50, %v430_v48  ;;  %v517_v52 = vpop.f32.mrb[1].mxu0 }
 0x22a   : > { %v518_v53 = vadd.f32 %v517_v52, %v434_v49  ;;  %v519_v54 = vpop.f32.mrb[2].mxu0 }
 0x22b   : > { %v524_v55 = vmul.f32 %v516_v51, %v516_v51  ;;  %v520_v56 = vpop.f32.mrb[3].mxu0  ;;  %v522_v5 = vmul.f32 0.5, %v516_v51 }
 0x22c   : > { %v525_v57 = vmul.f32 %v518_v53, %v518_v53  ;;  %v523_v7 = vmul.f32 0.5, %v518_v53 }
 0x22d   : > { %v526_v58 = vmul.f32 %v524_v55, %v516_v51 }
 0x22e   : > { %v527_v59 = vmul.f32 %v525_v57, %v518_v53 }
 0x22f   : > { %v528_v60 = vmul.f32 0.044715, %v526_v58 }
 0x230   : > { %v529_v61 = vmul.f32 0.044715, %v527_v59 }
 0x231   : > { %v530_v62 = vadd.f32 %v528_v60, %v516_v51 }
 0x232   : > { %v531_v63 = vadd.f32 %v529_v61, %v518_v53 }
 0x233   : > { %v532_v1 = vmul.f32 0.7978846, %v530_v62 }
 0x234   : > { %v533_v2 = vmul.f32 0.7978846, %v531_v63 }
 0x235   : > { %966 = vtanh.f32 %v532_v1 }
 0x236   : > { %968 = vtanh.f32 %v533_v2 }
 0x23f   : > { %v967_v3 = vpop.eup %966 }
 0x240   : > { %v969_v4 = vpop.eup %968  ;;  %v536_v6 = vadd.f32 1.0, %v967_v3 }
 0x241   : > { %v537_v8 = vadd.f32 1.0, %v969_v4 }
 0x242   : > { %v538_v9 = vmul.f32 %v536_v6, %v522_v5 }
 0x243   : > { %v539_v10 = vmul.f32 %v537_v8, %v523_v7 }
 0x244   : > { %v540_v12 = vpack.c.bf16 %v538_v9, %v538_v9 }
 0x245   : > { %v541_v11 = vpack.c.bf16 %v539_v10, %v539_v10 }
 0x247   : > { %703 = vmatprep.mubr.bf16.mxu1 %v541_v11 }
 0x248   : > { %704 = vmatmul.mubr.bf16.vlgmr.msra.gmra.mrb[0].mxu1 %v540_v12 }
 0x31b   : > { %v904_v14 = vpop.f32.mrb[0].mxu1 }
 0x31c   : > { %v905_v16 = vpop.f32.mrb[1].mxu1 }
 0x31d   : > { %v906_v17 = vadd.f32 %v905_v16, %v904_v14  ;;  %v907_v18 = vpop.f32.mrb[2].mxu1 }
 0x31e   : > { %v908_v19 = vpop.f32.mrb[3].mxu1 }
 0x31f   : > { %v711_v20 = vadd.f32 %v906_v17, %v542_v15 }
 0x321   : > { %712 = vst.msk [vmem:[#allocation3] sm:$0xff] %vm383_vm0, %v711_v20 }
 0x328   : > { %v717_v21 = vld [vmem:[#allocation3] sm:$0xff] }
 0x329   : > { %v718_v23 = vadd.f32 %v717_v21, %v1062_v0 }
 0x32b   : > { %v726_v24 = vadd.f32 %v885_v22, %v718_v23 }
 0x32d   : > { %727 = vst.msk [vmem:[%s374_s13] sm:$0xff] %vm383_vm0, %v726_v24 }
 0x32e PF: > { %s17_s26 = sadd.s32 1, %s992_s26   ;;  %s1179_s24 = smov %s988_s25 }
 0x32f   : > { %p14_p5 = scmp.ge.s32.totalorder %s17_s26, 4   ;;  %s1180_s25 = smov %s1182_s27 }
 0x331   :  { %16 = sbr.rel (!%p14_p5) target bundleno = 2 (0x2), region = 95 }

// kernel: gpt_forward.7
= control target key start
LH: loop header
LB: loop body
LE: loop exit
PB: predicated region body
PF: predicated region fallthrough
CT: control target
= control target key end

     0   :  { %s1273_s17 = smov 0   ;;  %s1275_s18 = smov 0   ;;  %s1414_s0 = inlined_call_operand.vmem [shape: f32[2,8,64], index: 0, kind: input, shape index: {}]   ;;  %s1415_s1 = inlined_call_operand.vmem [shape: f32[1,64], index: 1, kind: input, shape index: {}]   ;;  %s1416_s2 = inlined_call_operand.vmem [shape: f32[1,64], index: 2, kind: input, shape index: {}]   ;;  %s1417_s3 = inlined_call_operand.vmem [shape: bf16[64,64], index: 3, kind: input, shape index: {}]   ;;  %s1418_s4 = inlined_call_operand.vmem [shape: bf16[64,64], index: 4, kind: input, shape index: {}]   ;;  %s1419_s5 = inlined_call_operand.vmem [shape: bf16[64,64], index: 5, kind: input, shape index: {}]   ;;  %s1420_s6 = inlined_call_operand.vmem [shape: f32[1,64], index: 6, kind: input, shape index: {}]   ;;  %s1421_s7 = inlined_call_operand.vmem [shape: f32[1,64], index: 7, kind: input, shape index: {}]   ;;  %s1422_s8 = inlined_call_operand.vmem [shape: f32[1,64], index: 8, kind: input, shape index: {}]   ;;  %s1423_s9 = inlined_call_operand.vmem [shape: bf16[2,4,8,16], index: 9, kind: output, shape index: {0}]   ;;  %s1424_s10 = inlined_call_operand.vmem [shape: bf16[2,4,16,8], index: 10, kind: output, shape index: {1}]   ;;  %s1425_s11 = inlined_call_operand.vmem [shape: bf16[2,4,8,16], index: 11, kind: output, shape index: {2}]  }
   0x1   :  { %s1277_s19 = smov 0  }
   0x2 LB: > { %s34_s20 = sadd.s32 1, %s1202_s18  ;;  %p1025_p0 = scmp.ge.s32.totalorder %s1206_s19, 1  ;;  %s1206_s19 = sphi %s1277_s19, %s22_s19   ;;  %s1202_s18 = sphi %s1275_s18, %s1427_s18   ;;  %s1198_s17 = sphi %s1273_s17, %s1426_s17  }
   0x3   : > { %p36_p1 = scmp.ge.s32.totalorder %s34_s20, 2  ;;  %p364_p2 = scmp.lt.s32.totalorder %s1206_s19, 3 }
   0x5   : > { %s1429_s20 = smov (%p36_p1, %s34_s20), 0  ;;  %p365_p3 = pnand %p1025_p0, %p364_p2 }
   0x6   : > { %p425_p4 = scmp.lt.s32.totalorder (!%p365_p3), %s1198_s17, 1  ;;  %vm460_vm0 = vcmask (!%p365_p3), 523264   ;;  %v1170_v7 = vld [vmem:[%s1417_s3] sm:$0xff] (!%p365_p3)   ;;  %v1208_v9 = vmov (!%p365_p3), 0.0   ;;  %v1172_v10 = vld [vmem:[%s1417_s3 + $0x8] sm:$0xff] (!%p365_p3)   ;;  %vm1209_vm1 = vmmov (!%p365_p3), 0  }
   0x7   : > { %368 = sbr.rel (%p365_p3) target bundleno = 721 (0x2d1), region = 56  ;;  %v1171_v8 = vld [vmem:[%s1418_s4] sm:$0xff] (!%p365_p3)   ;;  %1105 = vmatprep.subr.bf16.mxu0 (!%p365_p3), %v1208_v9  ;;  %1117 = vmatprep.subr.bf16.mxu1 (!%p365_p3), %v1208_v9  ;;  %v1173_v11 = vld [vmem:[%s1418_s4 + $0x8] sm:$0xff] (!%p365_p3)   ;;  %v1174_v12 = vld [vmem:[%s1417_s3 + $0x10] sm:$0xff] (!%p365_p3)   ;;  %vm768_vm2 = vcmask (!%p365_p3), 125952   ;;  %s1210_s12 = smov (!%p365_p3), 96  }
   0x8   : > { %1106 = vmatpush3.bf16.msra.mxu0 (!%p365_p3), %v1170_v7  ;;  %1118 = vmatpush3.bf16.msra.mxu1 (!%p365_p3), %v1171_v8  ;;  %v1175_v13 = vld [vmem:[%s1418_s4 + $0x10] sm:$0xff] (!%p365_p3)   ;;  %v1176_v14 = vld [vmem:[%s1417_s3 + $0x18] sm:$0xff] (!%p365_p3)   ;;  %v1033_v20 = vld [vmem:[%s1415_s1] ss:$0 sm:$0xff] (!%p365_p3)  ;;  %s1211_s13 = smov (!%p365_p3), 80   ;;  %s1212_s23 = smov (!%p365_p3), 112  }
   0x9   : > { %1107 = vmatprep.subr.bf16.mxu0 (!%p365_p3), %v1208_v9  ;;  %1119 = vmatprep.subr.bf16.mxu1 (!%p365_p3), %v1208_v9  ;;  %v1177_v15 = vld [vmem:[%s1418_s4 + $0x18] sm:$0xff] (!%p365_p3)   ;;  %v1034_v22 = vld [vmem:[%s1416_s2] ss:$0 sm:$0xff] (!%p365_p3)  ;;  %v1179_v27 = vld [vmem:[%s1419_s5 + $0x8] sm:$0xff] (!%p365_p3)   ;;  %vm777_vm3 = vcmask (!%p365_p3), 60416  }
   0xa   : > { %1113 = vmatprep.mubr.msk.bf16.mxu0 (!%p365_p3), %vm1209_vm1, %v1208_v9  ;;  %1125 = vmatprep.mubr.msk.bf16.mxu1 (!%p365_p3), %vm1209_vm1, %v1208_v9  ;;  %v1178_v25 = vld [vmem:[%s1419_s5] sm:$0xff] (!%p365_p3)   ;;  %v1180_v28 = vld [vmem:[%s1419_s5 + $0x10] sm:$0xff] (!%p365_p3)   ;;  %v1181_v29 = vld [vmem:[%s1419_s5 + $0x18] sm:$0xff] (!%p365_p3)  }
   0xb   : > { %v1035_v30 = vld [vmem:[%s1420_s6] ss:$0 sm:$0xff] (!%p365_p3) }
   0xc   : > { %1108 = vmatpush3.bf16.msra.mxu0 (!%p365_p3), %v1172_v10  ;;  %1120 = vmatpush3.bf16.msra.mxu1 (!%p365_p3), %v1173_v11  ;;  %v1041_v31 = vld [vmem:[%s1421_s7] ss:$0 sm:$0xff] (!%p365_p3) }
   0xd   : > { %1109 = vmatprep.subr.bf16.mxu0 (!%p365_p3), %v1208_v9  ;;  %1121 = vmatprep.subr.bf16.mxu1 (!%p365_p3), %v1208_v9  ;;  %v1047_v43 = vld [vmem:[%s1422_s8] ss:$0 sm:$0xff] (!%p365_p3) }
   0xe   : > { %s1431_s17 = smov (!%p425_p4, %s1198_s17), 1 }
   0xf   : > { %s1026_s21 = sshll.u32 %s1431_s17, 3  ;;  %s1077_s27 = sshll.u32 %s1431_s17, 4 }
  0x10   : > { %s431_s24 = scalar_lea.vmem %s1414_s0, %s1026_s21  ;;  %1110 = vmatpush3.bf16.msra.mxu0 %v1174_v12  ;;  %1122 = vmatpush3.bf16.msra.mxu1 %v1175_v13  ;;  %s1357_s30 = scalar_lea.vmem %s1423_s9, %s1077_s27 }
  0x11   : > { %v457_v0 = vld [vmem:[%s431_s24] sm:$0xff]  ;;  %1111 = vmatprep.subr.bf16.mxu0 %v1208_v9  ;;  %1123 = vmatprep.subr.bf16.mxu1 %v1208_v9  ;;  %s1367_s22 = scalar_lea.vmem %s1425_s11, %s1077_s27  ;;  %s1078_s24 = sshll.u32 %s1431_s17, 5 }
  0x12   : > { %v461_v1 = vsel %vm460_vm0, %v457_v0, 0.0  ;;  %s1379_s27 = scalar_lea.vmem %s1424_s10, %s1078_s24 }
  0x13   : > { %462 = vadd.xlane.f32.xlu0 %v461_v1 }
  0x14   : > { %1112 = vmatpush3.bf16.msra.mxu0 %v1176_v14  ;;  %1124 = vmatpush3.bf16.msra.mxu1 %v1177_v15 }
  0x15   : > { %1129 = vmatprep.subr.bf16.mxu0 %v1208_v9 }
  0xa0   : > { %v463_v2 = vpop.xlane.xlu0 %462 }
  0xa1   : > { %v465_v3 = vmul.f32 0.015625, %v463_v2 }
  0xa3   : > { %v466_v4 = vsub.f32 %v457_v0, %v465_v3 }
  0xa5   : > { %v467_v5 = vmul.f32 %v466_v4, %v466_v4 }
  0xa7   : > { %v468_v6 = vsel %vm460_vm0, %v467_v5, 0.0 }
  0xa8   : > { %469 = vadd.xlane.f32.xlu0 %v468_v6 }
 0x135   : > { %v470_v16 = vpop.xlane.xlu0 %469 }
 0x136   : > { %v471_v17 = vmul.f32 0.015625, %v470_v16 }
 0x138   : > { %v472_v18 = vadd.f32 1e-05, %v471_v17 }
 0x13a   : > { %1182 = vrsqrt.f32 %v472_v18 }
 0x144   : > { %v1183_v19 = vpop.eup %1182 }
 0x145   : > { %v474_v21 = vmul.f32 %v1183_v19, %v466_v4 }
 0x147   : > { %v481_v23 = vmul.f32 %v1033_v20, %v474_v21 }
 0x149   : > { %v488_v24 = vadd.f32 %v1034_v22, %v481_v23 }
 0x14b   : > { %v489_v26 = vpack.c.bf16 %v488_v24, %v488_v24 }
 0x14d   : > { %1114 = vmatmul.mubr.msk.bf16.vlgmr.msra.gmra.mrb[0].mxu0 %vm460_vm0, %v489_v26  ;;  %1126 = vmatmul.mubr.msk.bf16.vlgmr.msra.gmra.mrb[0].mxu1 %vm460_vm0, %v489_v26 }
 0x14e   : > { %1130 = vmatpush3.bf16.msra.mxu0 %v1178_v25  ;;  %1137 = vmatprep.mubr.msk.bf16.mxu0 %vm1209_vm1, %v1208_v9 }
 0x14f   : > { %1131 = vmatprep.subr.bf16.mxu0 %v1208_v9 }
 0x152   : > { %1132 = vmatpush3.bf16.msra.mxu0 %v1179_v27 }
 0x153   : > { %1133 = vmatprep.subr.bf16.mxu0 %v1208_v9 }
 0x156   : > { %1134 = vmatpush3.bf16.msra.mxu0 %v1180_v28 }
 0x157   : > { %1135 = vmatprep.subr.bf16.mxu0 %v1208_v9 }
 0x15a   : > { %1136 = vmatpush3.bf16.msra.mxu0 %v1181_v29 }
 0x15d   : > { %1138 = vmatmul.mubr.msk.bf16.vlgmr.msra.gmra.mrb[4].mxu0 %vm460_vm0, %v489_v26 }
 0x220   : > { %v566_v32 = vpop.f32.mrb[0].mxu0  ;;  %v645_v33 = vpop.f32.mrb[0].mxu1 }
 0x221   : > { %v567_v34 = vadd.f32 %v1035_v30, %v566_v32  ;;  %v1115_v35 = vpop.f32.mrb[1].mxu0  ;;  %v1127_v36 = vpop.f32.mrb[1].mxu1  ;;  %v646_v37 = vadd.f32 %v1041_v31, %v645_v33 }
 0x222   : > { %v569_v38 = vpop.f32.mrb[2].mxu0  ;;  %v648_v39 = vpop.f32.mrb[2].mxu1 }
 0x223   : > { %v730_v40 = vpack.c.bf16 %v567_v34, %v567_v34  ;;  %731 = vxpose.xlu1.b32.start.end [1/1] (short) (narrow) %v646_v37, 64  ;;  %v1116_v41 = vpop.f32.mrb[3].mxu0  ;;  %v1128_v42 = vpop.f32.mrb[3].mxu1 }
 0x225   : > { %807 = vrot.lane.b32.xlu0 %v730_v40, %s1210_s12  ;;  %769 = vst.msk [vmem:[%s1357_s30] sm:$0xf] %vm768_vm2, %v730_v40 }
 0x229   : > { %827 = vrot.lane.b32.xlu0 %v730_v40, %s1211_s13 }
 0x230   : > { %v724_v44 = vpop.f32.mrb[4].mxu0 }
 0x231   : > { %v725_v45 = vadd.f32 %v1047_v43, %v724_v44  ;;  %v1139_v46 = vpop.f32.mrb[5].mxu0 }
 0x232   : > { %v727_v47 = vpop.f32.mrb[6].mxu0 }
 0x233   : > { %v767_v48 = vpack.c.bf16 %v725_v45, %v725_v45  ;;  %v1140_v49 = vpop.f32.mrb[7].mxu0 }
 0x235   : > { %802 = vrot.lane.b32.xlu0 %v767_v48, %s1212_s23  ;;  %780 = vst.msk [vmem:[%s1367_s22] sm:$0xf] %vm768_vm2, %v767_v48 }
 0x239   : > { %822 = vrot.lane.b32.xlu0 %v767_v48, %s1210_s12 }
 0x23d   : > { %842 = vrot.lane.b32.xlu0 %v767_v48, %s1211_s13 }
 0x25d   : > { %784 = vrot.lane.b32.xlu1 %v730_v40, %s1212_s23 }
 0x297   : > { %v808_v50 = vpop.permute.xlu0 %807 }
 0x298   : > { %1063 = vst.msk [vmem:[%s1357_s30 + $0x8] sm:$0xf] %vm768_vm2, %v808_v50 }
 0x29b   : > { %v828_v51 = vpop.permute.xlu0 %827 }
 0x29c   : > { %1069 = vst.msk [vmem:[%s1357_s30 + $0xc] sm:$0xf] %vm768_vm2, %v828_v51 }
 0x2a3   : > { %v747_v52 = vpop.trf.xlu1 }
 0x2a4   : > { %v1080_v53 = vpack.c.bf16 %v747_v52, %v747_v52 }
 0x2a6   : > { %778 = vst.msk [vmem:[%s1379_s27] sm:$0xf] %vm777_vm3, %v1080_v53 }
 0x2a7   : > { %v803_v54 = vpop.permute.xlu0 %802  ;;  %v748_v55 = vpop.trf.xlu1 }
 0x2a8   : > { %1062 = vst.msk [vmem:[%s1367_s22 + $0x4] sm:$0xf] %vm768_vm2, %v803_v54  ;;  %v1081_v56 = vpack.c.bf16 %v748_v55, %v748_v55 }
 0x2aa   : > { %779 = vst.msk [vmem:[%s1379_s27 + $0x4] sm:$0xf] %vm777_vm3, %v1081_v56 }
 0x2ab   : > { %v823_v57 = vpop.permute.xlu0 %822  ;;  %v749_v58 = vpop.trf.xlu1 }
 0x2ac   : > { %1068 = vst.msk [vmem:[%s1367_s22 + $0x8] sm:$0xf] %vm768_vm2, %v823_v57  ;;  %v1083_v59 = vpack.c.bf16 %v749_v58, %v749_v58 }
 0x2ae   : > { %1059 = vst.msk [vmem:[%s1379_s27 + $0x8] sm:$0xf] %vm777_vm3, %v1083_v59 }
 0x2af   : > { %v843_v60 = vpop.permute.xlu0 %842  ;;  %v750_v61 = vpop.trf.xlu1 }
 0x2b0   : > { %1074 = vst.msk [vmem:[%s1367_s22 + $0xc] sm:$0xf] %vm768_vm2, %v843_v60  ;;  %v1084_v62 = vpack.c.bf16 %v750_v61, %v750_v61 }
 0x2b2   : > { %1060 = vst.msk [vmem:[%s1379_s27 + $0xc] sm:$0xf] %vm777_vm3, %v1084_v62 }
 0x2b3   : > { %v751_v63 = vpop.trf.xlu1 }
 0x2b4   : > { %v1086_v0 = vpack.c.bf16 %v751_v63, %v751_v63 }
 0x2b6   : > { %1066 = vst.msk [vmem:[%s1379_s27 + $0x10] sm:$0xf] %vm777_vm3, %v1086_v0 }
 0x2b7   : > { %v752_v1 = vpop.trf.xlu1 }
 0x2b8   : > { %v1087_v2 = vpack.c.bf16 %v752_v1, %v752_v1 }
 0x2ba   : > { %1067 = vst.msk [vmem:[%s1379_s27 + $0x14] sm:$0xf] %vm777_vm3, %v1087_v2 }
 0x2bb   : > { %v753_v3 = vpop.trf.xlu1 }
 0x2bc   : > { %v1088_v4 = vpack.c.bf16 %v753_v3, %v753_v3 }
 0x2be   : > { %1072 = vst.msk [vmem:[%s1379_s27 + $0x18] sm:$0xf] %vm777_vm3, %v1088_v4 }
 0x2bf   : > { %v754_v5 = vpop.trf.xlu1 }
 0x2c0   : > { %v1089_v6 = vpack.c.bf16 %v754_v5, %v754_v5 }
 0x2c2   : > { %1073 = vst.msk [vmem:[%s1379_s27 + $0x1c] sm:$0xf] %vm777_vm3, %v1089_v6 }
 0x2cf   : > { %v785_v7 = vpop.permute.xlu1 %784 }
 0x2d0   : > { %1056 = vst.msk [vmem:[%s1357_s30 + $0x4] sm:$0xf] %vm768_vm2, %v785_v7 }
 0x2d1 PF: > { %s22_s19 = sadd.s32 1, %s1206_s19   ;;  %s1426_s17 = smov %s1202_s18 }
 0x2d2   : > { %p19_p5 = scmp.ge.s32.totalorder %s22_s19, 4   ;;  %s1427_s18 = smov %s1429_s20 }
 0x2d4   :  { %21 = sbr.rel (!%p19_p5) target bundleno = 2 (0x2), region = 119 }

// kernel: gpt_forward.8
= control target key start
LH: loop header
LB: loop body
LE: loop exit
PB: predicated region body
PF: predicated region fallthrough
CT: control target
= control target key end

     0   :  { %s1483_s21 = smov 0   ;;  %s1485_s22 = smov 0   ;;  %s1684_s0 = inlined_call_operand.vmem [shape: f32[2,8,64], index: 0, kind: input, shape index: {}]   ;;  %s1685_s1 = inlined_call_operand.vmem [shape: bf16[2,4,8,16], index: 1, kind: input, shape index: {}]   ;;  %s1686_s2 = inlined_call_operand.vmem [shape: bf16[2,4,16,8], index: 2, kind: input, shape index: {}]   ;;  %s1687_s3 = inlined_call_operand.vmem [shape: bf16[2,4,8,16], index: 3, kind: input, shape index: {}]   ;;  %s1688_s4 = inlined_call_operand.vmem [shape: bf16[64,64], index: 4, kind: input, shape index: {}]   ;;  %s1689_s5 = inlined_call_operand.vmem [shape: f32[1,64], index: 5, kind: input, shape index: {}]   ;;  %s1690_s6 = inlined_call_operand.vmem [shape: f32[2,8,64], index: 6, kind: output, shape index: {}]  }
   0x1   :  { %s1487_s23 = smov 0  }
   0x2 LB: > { %s35_s24 = sadd.s32 1, %s1435_s22  ;;  %p1239_p0 = scmp.ge.s32.totalorder %s1439_s23, 1  ;;  %s1439_s23 = sphi %s1487_s23, %s16_s23   ;;  %s1435_s22 = sphi %s1485_s22, %s1692_s22   ;;  %s1431_s21 = sphi %s1483_s21, %s1691_s21  }
   0x3   : > { %p37_p1 = scmp.ge.s32.totalorder %s35_s24, 2  ;;  %p282_p2 = scmp.lt.s32.totalorder %s1439_s23, 3 }
   0x5   : > { %s1694_s24 = smov (%p37_p1, %s35_s24), 0  ;;  %p283_p3 = pnand %p1239_p0, %p282_p2 }
   0x6   : > { %p340_p4 = scmp.lt.s32.totalorder (!%p283_p3), %s1431_s21, 1  ;;  %vm392_vm0 = vcmask (!%p283_p3), 130048   ;;  %v1441_v0 = vmov (!%p283_p3), 0.0   ;;  %vm1442_vm1 = vmmov (!%p283_p3), 0   ;;  %vm383_vm2 = vcmask (!%p283_p3), 7168   ;;  %s1445_s20 = smov (!%p283_p3), 16  }
   0x7   : > { %286 = sbr.rel (%p283_p3) target bundleno = 1169 (0x491), region = 44  ;;  %1292 = vmatprep.subr.bf16.mxu1 (!%p283_p3), %v1441_v0  ;;  %1294 = vmatprep.mubr.msk.bf16.mxu1 (!%p283_p3), %vm1442_vm1, %v1441_v0  ;;  %393 = vst.msk [vmem:[#allocation4] sm:$0xff] (!%p283_p3), %vm392_vm0, %v1441_v0  ;;  %394 = vst.msk [vmem:[#allocation4 + $0x8] sm:$0xff] (!%p283_p3), %vm392_vm0, %v1441_v0  ;;  %v1443_v9 = vmov (!%p283_p3), -inf   ;;  %v622_v10 = vlaneseq (!%p283_p3)  ;;  %vm641_vm4 = vcmask (!%p283_p3), 64512   ;;  %v1444_v41 = vmov (!%p283_p3), 0  }
   0x8   : > { %395 = vst.msk [vmem:[#allocation4 + $0x10] sm:$0xff] (!%p283_p3), %vm392_vm0, %v1441_v0  ;;  %396 = vst.msk [vmem:[#allocation4 + $0x18] sm:$0xff] (!%p283_p3), %vm392_vm0, %v1441_v0  ;;  %1304 = vmatprep.subr.bf16.mxu0 (!%p283_p3), %v1441_v0  ;;  %1306 = vmatprep.mubr.msk.bf16.mxu0 (!%p283_p3), %vm1442_vm1, %v1441_v0  ;;  %vm766_vm5 = vcmask (!%p283_p3), 1043456   ;;  %vm1013_vm6 = vcmask (!%p283_p3), 261120   ;;  %vm1015_vm7 = vcmask (!%p283_p3), 392192   ;;  %vm1057_vm8 = vcmask (!%p283_p3), 523264  }
   0x9   : > { %384 = vst.msk [vmem:[#allocation2] sm:$0xff] (!%p283_p3), %vm383_vm2, %v1443_v9  ;;  %385 = vst.msk [vmem:[#allocation2 + $0x8] sm:$0xff] (!%p283_p3), %vm383_vm2, %v1443_v9  ;;  %v623_v11 = vshrl.u32 (!%p283_p3), %v622_v10, 7  ;;  %v627_v12 = vand.u32 (!%p283_p3), 127, %v622_v10  ;;  %1383 = vset.pattern.permute.xlu0 (!%p283_p3), %v1444_v41  ;;  %1384 = vset.pattern.permute.xlu1 (!%p283_p3), %v1444_v41 }
   0xa   : > { %386 = vst.msk [vmem:[#allocation2 + $0x10] sm:$0xff] (!%p283_p3), %vm383_vm2, %v1443_v9  ;;  %387 = vst.msk [vmem:[#allocation2 + $0x18] sm:$0xff] (!%p283_p3), %vm383_vm2, %v1443_v9 }
   0xb   : > { %388 = vst.msk [vmem:[#allocation3] sm:$0xff] (!%p283_p3), %vm383_vm2, %v1441_v0  ;;  %389 = vst.msk [vmem:[#allocation3 + $0x8] sm:$0xff] (!%p283_p3), %vm383_vm2, %v1441_v0  ;;  %vm630_vm3 = vcmp.le.s32.totalorder (!%p283_p3), %v627_v12, %v623_v11 }
   0xc   : > { %390 = vst.msk [vmem:[#allocation3 + $0x10] sm:$0xff] (!%p283_p3), %vm383_vm2, %v1441_v0  ;;  %391 = vst.msk [vmem:[#allocation3 + $0x18] sm:$0xff] (!%p283_p3), %vm383_vm2, %v1441_v0 }
   0xe   : > { %s1696_s21 = smov (!%p340_p4, %s1431_s21), 1 }
   0xf   : > { %s1269_s25 = sshll.u32 %s1696_s21, 5  ;;  %s1268_s26 = sshll.u32 %s1696_s21, 4 }
  0x10   : > { %s362_s29 = scalar_lea.vmem %s1686_s2, %s1269_s25  ;;  %s354_s8 = scalar_lea.vmem %s1685_s1, %s1268_s26  ;;  %v1569_v42 = vld [vmem:[#allocation2] sm:$0xff]  ;;  %v1584_v49 = vld [vmem:[#allocation2 + $0x8] sm:$0xff] }
  0x11   : > { %v1385_v1 = vld [vmem:[%s362_s29] sm:$0xff]   ;;  %v1386_v3 = vld [vmem:[%s362_s29 + $0x8] sm:$0xff]   ;;  %v1387_v4 = vld [vmem:[%s362_s29 + $0x10] sm:$0xff]   ;;  %s370_s11 = scalar_lea.vmem %s1687_s3, %s1268_s26  ;;  %s1446_s25 = smov 32  }
  0x12   : > { %v404_v2 = vld [vmem:[%s354_s8] sm:$0xf]  ;;  %1293 = vmatpush3.bf16.msra.mxu1 %v1385_v1  ;;  %1305 = vmatpush3.bf16.msra.mxu0 %v1387_v4  ;;  %v406_v5 = vld [vmem:[%s354_s8 + $0x8] sm:$0xf]  ;;  %v405_v6 = vld [vmem:[%s354_s8 + $0x4] sm:$0xf] }
  0x13   : > { %1298 = vmatprep.subr.bf16.mxu1 %v1441_v0  ;;  %1316 = vmatprep.subr.bf16.mxu0 %v1441_v0  ;;  %v1388_v7 = vld [vmem:[%s362_s29 + $0x18] sm:$0xff]   ;;  %v407_v8 = vld [vmem:[%s354_s8 + $0xc] sm:$0xf]  ;;  %v1574_v45 = vld [vmem:[#allocation2 + $0x10] sm:$0xff]  ;;  %s1447_s26 = smov 48   ;;  %s1240_s27 = sshll.u32 %s1696_s21, 3 }
  0x14   : > { %v1598_v54 = vld [vmem:[#allocation2 + $0x18] sm:$0xff]  ;;  %v416_v55 = vld [vmem:[%s370_s11] sm:$0xf]  ;;  %v417_v60 = vld [vmem:[%s370_s11 + $0x4] sm:$0xf]  ;;  %s346_s30 = scalar_lea.vmem %s1684_s0, %s1240_s27 }
  0x15   : > { %1295 = vmatmul.mubr.msk.bf16.vlgmr.msra.gmra.mrb[0].mxu1 %vm392_vm0, %v404_v2  ;;  %1307 = vmatmul.mubr.msk.bf16.vlgmr.msra.gmra.mrb[0].mxu0 %vm392_vm0, %v406_v5  ;;  %v768_v57 = vsel %vm766_vm5, %v416_v55, 0  ;;  %v814_v61 = vsel %vm766_vm5, %v417_v60, 0  ;;  %v418_v62 = vld [vmem:[%s370_s11 + $0x8] sm:$0xf]  ;;  %v419_v1 = vld [vmem:[%s370_s11 + $0xc] sm:$0xf]  ;;  %s377_s11 = scalar_lea.vmem %s1690_s6, %s1240_s27 }
  0x16   : > { %1299 = vmatpush3.bf16.msra.mxu1 %v1386_v3  ;;  %1300 = vmatprep.mubr.msk.bf16.mxu1 %vm1442_vm1, %v1441_v0  ;;  %v860_v63 = vsel %vm766_vm5, %v418_v62, 0  ;;  %v906_v2 = vsel %vm766_vm5, %v419_v1, 0  ;;  %v705_v41 = vld [vmem:[#allocation3 + $0x18] sm:$0xff]  ;;  %v732_v1 = vld [vmem:[#allocation4 + $0x8] sm:$0xff] }
  0x17   : > { %1310 = vmatprep.subr.bf16.mxu1 %v1441_v0  ;;  %1318 = vmatprep.mubr.msk.bf16.mxu0 %vm1442_vm1, %v1441_v0 }
  0x18   : > { %1317 = vmatpush3.bf16.msra.mxu0 %v768_v57 }
  0x19   : > { %1328 = vmatprep.subr.bf16.mxu0 %v1441_v0 }
  0x1d   : > { %1301 = vmatmul.mubr.msk.bf16.vlgmr.msra.gmra.mrb[4].mxu1 %vm392_vm0, %v405_v6 }
  0x1e   : > { %1311 = vmatpush3.bf16.msra.mxu1 %v1388_v7  ;;  %1312 = vmatprep.mubr.msk.bf16.mxu1 %vm1442_vm1, %v1441_v0 }
  0x1f   : > { %1322 = vmatprep.subr.bf16.mxu1 %v1441_v0 }
  0x25   : > { %1313 = vmatmul.mubr.msk.bf16.vlgmr.msra.gmra.mrb[8].mxu1 %vm392_vm0, %v407_v8 }
  0x26   : > { %1324 = vmatprep.mubr.msk.bf16.mxu1 %vm1442_vm1, %v1441_v0  ;;  %1323 = vmatpush3.bf16.msra.mxu1 %v814_v61 }
  0x27   : > { %1334 = vmatprep.subr.bf16.mxu1 %v1441_v0 }
  0xe8   : > { %v464_v13 = vpop.f32.mrb[0].mxu1  ;;  %v562_v19 = vpop.f32.mrb[0].mxu0 }
  0xe9   : > { %v617_v14 = vmul.f32 0.25, %v464_v13  ;;  %v1296_v15 = vpop.f32.mrb[1].mxu1  ;;  %v619_v21 = vmul.f32 0.25, %v562_v19  ;;  %v1308_v22 = vpop.f32.mrb[1].mxu0 }
  0xea   : > { %v467_v16 = vpop.f32.mrb[2].mxu1  ;;  %v565_v23 = vpop.f32.mrb[2].mxu0 }
  0xeb   : > { %v1297_v17 = vpop.f32.mrb[3].mxu1  ;;  %v1556_v18 = vsel %vm630_vm3, %v617_v14, -1e+30  ;;  %v1309_v24 = vpop.f32.mrb[3].mxu0  ;;  %v1561_v25 = vsel %vm630_vm3, %v619_v21, -1e+30 }
  0xec   : > { %v642_v20 = vsel %vm641_vm4, %v1556_v18, -inf  ;;  %v648_v26 = vsel %vm641_vm4, %v1561_v25, -inf }
  0xed   : > { %643 = vmax.xlane.f32.xlu0 %v642_v20  ;;  %649 = vmax.xlane.f32.xlu1 %v648_v26 }
  0xf0   : > { %v513_v27 = vpop.f32.mrb[4].mxu1 }
  0xf1   : > { %v618_v28 = vmul.f32 0.25, %v513_v27  ;;  %v1302_v29 = vpop.f32.mrb[5].mxu1 }
  0xf2   : > { %v516_v30 = vpop.f32.mrb[6].mxu1 }
  0xf3   : > { %v1303_v31 = vpop.f32.mrb[7].mxu1  ;;  %v634_v32 = vsel %vm630_vm3, %v618_v28, -1e+30 }
  0xf4   : > { %v645_v33 = vsel %vm641_vm4, %v634_v32, -inf }
  0xf5   : > { %646 = vmax.xlane.f32.xlu0 %v645_v33 }
  0xf8   : > { %v611_v34 = vpop.f32.mrb[8].mxu1 }
  0xf9   : > { %v620_v35 = vmul.f32 0.25, %v611_v34  ;;  %v1314_v36 = vpop.f32.mrb[9].mxu1  ;;  %v703_v34 = vld [vmem:[#allocation3 + $0x8] sm:$0xff] }
  0xfa   : > { %v614_v37 = vpop.f32.mrb[10].mxu1 }
  0xfb   : > { %v1315_v38 = vpop.f32.mrb[11].mxu1  ;;  %v636_v39 = vsel %vm630_vm3, %v620_v35, -1e+30  ;;  %v704_v37 = vld [vmem:[#allocation3 + $0x10] sm:$0xff] }
  0xfc   : > { %v651_v40 = vsel %vm641_vm4, %v636_v39, -inf }
  0xfd   : > { %652 = vmax.xlane.f32.xlu1 %v651_v40 }
 0x17a   : > { %v644_v43 = vpop.xlane.xlu0 %643  ;;  %v650_v47 = vpop.xlane.xlu1 %649 }
 0x17b   : > { %v1572_v44 = vmax.f32 %v1569_v42, %v644_v43  ;;  %v1582_v48 = vmax.f32 %v1574_v45, %v650_v47 }
 0x17d   : > { %v658_v46 = vsub.f32 %v1569_v42, %v1572_v44  ;;  %956 = vst.msk [vmem:[#allocation2] sm:$0xff] %vm383_vm2, %v1572_v44  ;;  %672 = vperm.xlu0 %1383, %v1572_v44   ;;  %v660_v50 = vsub.f32 %v1574_v45, %v1582_v48  ;;  %958 = vst.msk [vmem:[#allocation2 + $0x10] sm:$0xff] %vm383_vm2, %v1582_v48 }
 0x17f   : > { %v666_v26 = vmul.f32 1.442695, %v660_v50  ;;  %v662_v33 = vmul.f32 1.442695, %v658_v46 }
 0x182   : > { %v647_v51 = vpop.xlane.xlu0 %646 }
 0x183   : > { %v1591_v52 = vmax.f32 %v1584_v49, %v647_v51 }
 0x185   : > { %v659_v53 = vsub.f32 %v1584_v49, %v1591_v52  ;;  %957 = vst.msk [vmem:[#allocation2 + $0x8] sm:$0xff] %vm383_vm2, %v1591_v52  ;;  %677 = vperm.xlu1 %1384, %v1591_v52   ;;  %v702_v49 = vld [vmem:[#allocation3] sm:$0xff] }
 0x187   : > { %v664_v28 = vmul.f32 1.442695, %v659_v53 }
 0x189   : > { %682 = vperm.xlu1 %1384, %v1582_v48  }
 0x18a   : > { %v653_v56 = vpop.xlane.xlu1 %652 }
 0x18b   : > { %v657_v58 = vmax.f32 %v1598_v54, %v653_v56 }
 0x18d   : > { %v661_v59 = vsub.f32 %v1598_v54, %v657_v58  ;;  %959 = vst.msk [vmem:[#allocation2 + $0x18] sm:$0xff] %vm383_vm2, %v657_v58  ;;  %687 = vperm.xlu1 %1384, %v657_v58  }
 0x18f   : > { %v668_v29 = vmul.f32 1.442695, %v661_v59  ;;  %v1389_v59 = vld [vmem:[%s1688_s4] sm:$0xff]  }
 0x1fc   : > { %v673_v3 = vpop.permute.xlu0 %672 }
 0x1fd   : > { %v690_v4 = vsub.f32 %v1556_v18, %v673_v3 }
 0x1ff   : > { %v694_v5 = vmul.f32 1.442695, %v690_v4  ;;  %v733_v4 = vld [vmem:[#allocation4 + $0x10] sm:$0xff] }
 0x201   : > { %1393 = vpow2.f32 %v694_v5 }
 0x204   : > { %v678_v6 = vpop.permute.xlu1 %677 }
 0x205   : > { %v691_v7 = vsub.f32 %v634_v32, %v678_v6 }
 0x207   : > { %v696_v8 = vmul.f32 1.442695, %v691_v7 }
 0x208   : > { %v683_v9 = vpop.permute.xlu1 %682 }
 0x209   : > { %1395 = vpow2.f32 %v696_v8  ;;  %v692_v10 = vsub.f32 %v1561_v25, %v683_v9 }
 0x20b   : > { %v1394_v11 = vpop.eup %1393  ;;  %v698_v12 = vmul.f32 1.442695, %v692_v10 }
 0x20c   : > { %v688_v13 = vpop.permute.xlu1 %687  ;;  %v759_v14 = vpack.c.bf16 %v1394_v11, %v1394_v11  ;;  %v710_v27 = vsel %vm641_vm4, %v1394_v11, 0.0 }
 0x20d   : > { %1397 = vpow2.f32 %v698_v12  ;;  %v693_v15 = vsub.f32 %v636_v39, %v688_v13  ;;  %v734_v12 = vld [vmem:[#allocation4 + $0x18] sm:$0xff] }
 0x20e   : > { %1319 = vmatmul.mubr.msk.bf16.vlgmr.msra.gmra.mrb[4].mxu0 %vm641_vm4, %v759_v14 }
 0x20f   : > { %v700_v16 = vmul.f32 1.442695, %v693_v15  ;;  %1329 = vmatpush3.bf16.msra.mxu0 %v860_v63  ;;  %1330 = vmatprep.mubr.msk.bf16.mxu0 %vm1442_vm1, %v1441_v0 }
 0x210   : > { %1340 = vmatprep.subr.bf16.mxu0 %v1441_v0 }
 0x211   : > { %1399 = vpow2.f32 %v700_v16 }
 0x212   : > { %1401 = vpow2.f32 %v666_v26  ;;  %v1391_v26 = vld [vmem:[%s1688_s4 + $0x10] sm:$0xff]  }
 0x213   : > { %v1396_v17 = vpop.eup %1395  ;;  %1403 = vpow2.f32 %v664_v28 }
 0x214   : > { %v713_v18 = vsel %vm641_vm4, %v1396_v17, 0.0  ;;  %v760_v19 = vpack.c.bf16 %v1396_v17, %v1396_v17  ;;  %1405 = vpow2.f32 %v668_v29 }
 0x215   : > { %714 = vadd.xlane.f32.xlu1 %v713_v18  ;;  %1407 = vpow2.f32 %v662_v33 }
 0x216   : > { %1325 = vmatmul.mubr.msk.bf16.vlgmr.msra.gmra.mrb[12].mxu1 %vm641_vm4, %v760_v19 }
 0x217   : > { %v1398_v20 = vpop.eup %1397  ;;  %1335 = vmatpush3.bf16.msra.mxu1 %v906_v2  ;;  %1336 = vmatprep.mubr.msk.bf16.mxu1 %vm1442_vm1, %v1441_v0 }
 0x218   : > { %v716_v21 = vsel %vm641_vm4, %v1398_v20, 0.0  ;;  %v761_v22 = vpack.c.bf16 %v1398_v20, %v1398_v20 }
 0x219   : > { %717 = vadd.xlane.f32.xlu0 %v716_v21 }
 0x21a   : > { %1331 = vmatmul.mubr.msk.bf16.vlgmr.msra.gmra.mrb[8].mxu0 %vm641_vm4, %v761_v22 }
 0x21b   : > { %v1400_v23 = vpop.eup %1399  ;;  %1348 = vmatprep.mubr.msk.bf16.mxu0 %vm1442_vm1, %v1441_v0  ;;  %1341 = vmatpush3.bf16.msra.mxu0 %v1389_v59 }
 0x21c   : > { %v719_v24 = vsel %vm641_vm4, %v1400_v23, 0.0  ;;  %v762_v25 = vpack.c.bf16 %v1400_v23, %v1400_v23  ;;  %v1402_v30 = vpop.eup %1401  ;;  %1342 = vmatprep.subr.bf16.mxu0 %v1441_v0 }
 0x21d   : > { %720 = vadd.xlane.f32.xlu1 %v719_v24  ;;  %v1404_v31 = vpop.eup %1403  ;;  %v708_v39 = vmul.f32 %v1402_v30, %v704_v37 }
 0x21e   : > { %1337 = vmatmul.mubr.msk.bf16.vlgmr.msra.gmra.mrb[16].mxu1 %vm641_vm4, %v762_v25  ;;  %v1406_v32 = vpop.eup %1405  ;;  %v707_v35 = vmul.f32 %v1404_v31, %v703_v34  ;;  %v1390_v25 = vld [vmem:[%s1688_s4 + $0x8] sm:$0xff]   ;;  %v731_v34 = vld [vmem:[#allocation4] sm:$0xff] }
 0x21f   : > { %v709_v45 = vmul.f32 %v1406_v32, %v705_v41  ;;  %v1408_v47 = vpop.eup %1407  ;;  %1343 = vmatpush3.bf16.msra.mxu0 %v1390_v25 }
 0x220   : > { %v706_v46 = vmul.f32 %v1408_v47, %v702_v49  ;;  %1344 = vmatprep.subr.bf16.mxu0 %v1441_v0 }
 0x221   : > { %711 = vadd.xlane.f32.xlu1 %v710_v27  ;;  %v1392_v27 = vld [vmem:[%s1688_s4 + $0x18] sm:$0xff]  }
 0x223   : > { %1345 = vmatpush3.bf16.msra.mxu0 %v1391_v26 }
 0x224   : > { %1346 = vmatprep.subr.bf16.mxu0 %v1441_v0 }
 0x227   : > { %1347 = vmatpush3.bf16.msra.mxu0 %v1392_v27 }
 0x22f   : > { %747 = vperm.xlu0 %1383, %v1402_v30  }
 0x232   : > { %742 = vperm.xlu1 %1384, %v1404_v31  }
 0x236   : > { %752 = vperm.xlu1 %1384, %v1406_v32  }
 0x2a2   : > { %v715_v36 = vpop.xlane.xlu1 %714 }
 0x2a3   : > { %v723_v38 = vadd.f32 %v715_v36, %v707_v35 }
 0x2a5   : > { %728 = vst.msk [vmem:[#allocation3 + $0x8] sm:$0xff] %vm383_vm2, %v723_v38 }
 0x2a6   : > { %v718_v40 = vpop.xlane.xlu0 %717 }
 0x2a7   : > { %v724_v43 = vadd.f32 %v718_v40, %v708_v39 }
 0x2a9   : > { %729 = vst.msk [vmem:[#allocation3 + $0x10] sm:$0xff] %vm383_vm2, %v724_v43 }
 0x2aa   : > { %v721_v48 = vpop.xlane.xlu1 %720 }
 0x2ab   : > { %v725_v42 = vadd.f32 %v721_v48, %v709_v45 }
 0x2ac   : > { %v968_v44 = vld [vmem:[#allocation3 + $0x8] sm:$0xff] }
 0x2ad   : > { %730 = vst.msk [vmem:[#allocation3 + $0x18] sm:$0xff] %vm383_vm2, %v725_v42  ;;  %1409 = vrcp.f32 %v968_v44 }
 0x2ae   : > { %v712_v50 = vpop.xlane.xlu1 %711  ;;  %v748_v5 = vpop.permute.xlu0 %747 }
 0x2af   : > { %v722_v51 = vadd.f32 %v712_v50, %v706_v46  ;;  %v757_v10 = vmul.f32 %v748_v5, %v733_v4  ;;  %v1260_v50 = vld [vmem:[%s1689_s5] ss:$0 sm:$0xff] }
 0x2b0   : > { %v969_v52 = vld [vmem:[#allocation3 + $0x10] sm:$0xff] }
 0x2b1   : > { %727 = vst.msk [vmem:[#allocation3] sm:$0xff] %vm383_vm2, %v722_v51  ;;  %1411 = vrcp.f32 %v969_v52  ;;  %v1101_v52 = vld [vmem:[%s346_s30] sm:$0xff] }
 0x2b2   : > { %v743_v2 = vpop.permute.xlu1 %742 }
 0x2b3   : > { %v756_v3 = vmul.f32 %v743_v2, %v732_v1 }
 0x2b4   : > { %v970_v53 = vld [vmem:[#allocation3 + $0x18] sm:$0xff] }
 0x2b5   : > { %1413 = vrcp.f32 %v970_v53 }
 0x2b6   : > { %v753_v13 = vpop.permute.xlu1 %752 }
 0x2b7   : > { %v1410_v54 = vpop.eup %1409  ;;  %v758_v18 = vmul.f32 %v753_v13, %v734_v12 }
 0x2b8   : > { %982 = vperm.xlu1 %1384, %v1410_v54   ;;  %v967_v55 = vld [vmem:[#allocation3] sm:$0xff] }
 0x2b9   : > { %1415 = vrcp.f32 %v967_v55 }
 0x2bb   : > { %v1412_v56 = vpop.eup %1411 }
 0x2bc   : > { %987 = vperm.xlu1 %1384, %v1412_v56  }
 0x2bf   : > { %v1414_v57 = vpop.eup %1413 }
 0x2c0   : > { %737 = vperm.xlu1 %1384, %v1408_v47   ;;  %992 = vperm.xlu0 %1383, %v1414_v57  }
 0x2c3   : > { %v1416_v58 = vpop.eup %1415 }
 0x2c4   : > { %977 = vperm.xlu0 %1383, %v1416_v58  }
 0x2e1   : > { %v804_v60 = vpop.f32.mrb[4].mxu0 }
 0x2e2   : > { %v1320_v61 = vpop.f32.mrb[5].mxu0 }
 0x2e3   : > { %v807_v62 = vpop.f32.mrb[6].mxu0 }
 0x2e4   : > { %v1321_v63 = vpop.f32.mrb[7].mxu0 }
 0x2e9   : > { %v850_v6 = vpop.f32.mrb[12].mxu1 }
 0x2ea   : > { %v949_v7 = vadd.f32 %v850_v6, %v756_v3  ;;  %v1326_v8 = vpop.f32.mrb[13].mxu1 }
 0x2eb   : > { %v853_v9 = vpop.f32.mrb[14].mxu1 }
 0x2ec   : > { %953 = vst.msk [vmem:[#allocation4 + $0x8] sm:$0xff] %vm392_vm0, %v949_v7  ;;  %v1327_v11 = vpop.f32.mrb[15].mxu1 }
 0x2ed   : > { %v896_v14 = vpop.f32.mrb[8].mxu0 }
 0x2ee   : > { %v950_v15 = vadd.f32 %v896_v14, %v757_v10  ;;  %v1332_v16 = vpop.f32.mrb[9].mxu0 }
 0x2ef   : > { %v899_v17 = vpop.f32.mrb[10].mxu0 }
 0x2f0   : > { %954 = vst.msk [vmem:[#allocation4 + $0x10] sm:$0xff] %vm392_vm0, %v950_v15  ;;  %v1333_v19 = vpop.f32.mrb[11].mxu0 }
 0x2f1   : > { %v942_v20 = vpop.f32.mrb[16].mxu1 }
 0x2f2   : > { %v951_v21 = vadd.f32 %v942_v20, %v758_v18  ;;  %v1338_v22 = vpop.f32.mrb[17].mxu1 }
 0x2f3   : > { %v945_v23 = vpop.f32.mrb[18].mxu1  ;;  %v964_v29 = vld [vmem:[#allocation4 + $0x8] sm:$0xff] }
 0x2f4   : > { %955 = vst.msk [vmem:[#allocation4 + $0x18] sm:$0xff] %vm392_vm0, %v951_v21  ;;  %v1339_v24 = vpop.f32.mrb[19].mxu1 }
 0x2f7   : > { %v965_v31 = vld [vmem:[#allocation4 + $0x10] sm:$0xff] }
 0x2fb   : > { %v966_v36 = vld [vmem:[#allocation4 + $0x18] sm:$0xff] }
 0x337   : > { %v983_v28 = vpop.permute.xlu1 %982 }
 0x338   : > { %v996_v30 = vmul.f32 %v983_v28, %v964_v29 }
 0x33a   : > { %1000 = vrot.lane.b32.xlu1 %v996_v30, %s1445_s20 }
 0x33b   : > { %v988_v32 = vpop.permute.xlu1 %987 }
 0x33c   : > { %v997_v33 = vmul.f32 %v988_v32, %v965_v31 }
 0x33e   : > { %1004 = vrot.lane.b32.xlu0 %v997_v33, %s1446_s25 }
 0x33f   : > { %v993_v35 = vpop.permute.xlu0 %992  ;;  %v738_v37 = vpop.permute.xlu1 %737 }
 0x340   : > { %v998_v0 = vmul.f32 %v993_v35, %v966_v36  ;;  %v755_v38 = vmul.f32 %v738_v37, %v731_v34 }
 0x342   : > { %v948_v39 = vadd.f32 %v804_v60, %v755_v38  ;;  %1008 = vrot.lane.b32.xlu1 %v998_v0, %s1447_s26 }
 0x343   : > { %v978_v40 = vpop.permute.xlu0 %977 }
 0x344   : > { %952 = vst.msk [vmem:[#allocation4] sm:$0xff] %vm392_vm0, %v948_v39 }
 0x34b   : > { %v963_v41 = vld [vmem:[#allocation4] sm:$0xff] }
 0x34c   : > { %v995_v45 = vmul.f32 %v978_v40, %v963_v41 }
 0x3ac   : > { %v1001_v43 = vpop.permute.xlu1 %1000 }
 0x3ad   : > { %v1012_v48 = vsel %vm392_vm0, %v995_v45, %v1001_v43 }
 0x3b0   : > { %v1005_v47 = vpop.permute.xlu0 %1004 }
 0x3b1   : > { %v1014_v49 = vsel %vm1013_vm6, %v1012_v48, %v1005_v47 }
 0x3b4   : > { %v1009_v42 = vpop.permute.xlu1 %1008 }
 0x3b5   : > { %v1016_v44 = vsel %vm1015_vm7, %v1014_v49, %v1009_v42 }
 0x3b6   : > { %v1017_v46 = vpack.c.bf16 %v1016_v44, %v1016_v44 }
 0x3b8   : > { %1349 = vmatmul.mubr.msk.bf16.vlgmr.msra.gmra.mrb[12].mxu0 %vm1057_vm8, %v1017_v46 }
 0x48b   : > { %v1095_v51 = vpop.f32.mrb[12].mxu0 }
 0x48c   : > { %v1096_v53 = vadd.f32 %v1260_v50, %v1095_v51  ;;  %v1350_v54 = vpop.f32.mrb[13].mxu0 }
 0x48d   : > { %v1098_v55 = vpop.f32.mrb[14].mxu0 }
 0x48e   : > { %v1102_v56 = vadd.f32 %v1101_v52, %v1096_v53  ;;  %v1351_v57 = vpop.f32.mrb[15].mxu0 }
 0x490   : > { %1103 = vst.msk [vmem:[%s377_s11] sm:$0xff] %vm1057_vm8, %v1102_v56 }
 0x491 PF: > { %s16_s23 = sadd.s32 1, %s1439_s23   ;;  %s1691_s21 = smov %s1435_s22 }
 0x492   : > { %p13_p5 = scmp.ge.s32.totalorder %s16_s23, 4   ;;  %s1692_s22 = smov %s1694_s24 }
 0x494   :  { %15 = sbr.rel (!%p13_p5) target bundleno = 2 (0x2), region = 95 }

</bundles_post_ra>
